<compile_context>
chip_gen: v5e
topology: v5e:2x2
jax: 0.10.0
libtpu: 0.0.40
codegen_flags: <defaults>
</compile_context>

<pallas_src>
import functools

import numpy as np
import jax
import jax.numpy as jnp
from jax import lax
from jax.experimental import pallas as pl
from jax.experimental.pallas import tpu as pltpu


# --------------------------------------------------------------------------
# Kernel: one grid step == one batch element, fully fused ResnetBlock forward.
# --------------------------------------------------------------------------
def _resnet_block_kernel(
    x_ref,      # (C_in,  HW)      input image, lane-dense
    t_ref,      # (1,     T)       time embedding
    mask_ref,   # (9, 1,  HW)      per-tap validity masks (trace-time constant)
    w1_ref,     # (9, C_out, C_in) conv1 weights as 9 taps
    b1_ref,     # (C_out, 1)
    g1_ref,     # (C_out, 1)       GN1 gamma
    bt1_ref,    # (C_out, 1)       GN1 beta
    wm_ref,     # (T, 2*C_out)     time-MLP weight (transposed)
    bm_ref,     # (1, 2*C_out)
    w2_ref,     # (9, C_out, C_out)
    b2_ref,     # (C_out, 1)
    g2_ref,     # (C_out, 1)
    bt2_ref,    # (C_out, 1)
    wr_ref,     # (C_out, C_in)    1x1 residual conv weight (identity if dim==dim_out)
    br_ref,     # (C_out, 1)
    gmix_ref,   # (C_out, C_out)   group-mean mixing matrix
    o_ref,      # (C_out, HW)      output, single lane-dense store
    *, width: int, eps: float,
):
    c_in, hw = x_ref.shape
    c_out = w1_ref.shape[1]

    x = x_ref[...]                                    # (C_in, HW)

    def silu(v):
        return v * (1.0 / (1.0 + jnp.exp(-v)))

    def shift_lanes(v, off):
        # s[:, p] = v[:, p + off]; zero-filled at the ends. Per-tap masks take
        # care of row/column wrap so the result equals "same"-padded indexing.
        if off == 0:
            return v
        rows = v.shape[0]
        if off > 0:
            pad = jnp.zeros((rows, off), v.dtype)
            return jnp.concatenate([v[:, off:], pad], axis=1)
        pad = jnp.zeros((rows, -off), v.dtype)
        return jnp.concatenate([pad, v[:, : hw + off]], axis=1)

    def conv3x3(v, w_taps_ref, bias_col):
        # 3x3 same-padding conv as 9 shifted-tap matmuls on the (C, HW) layout.
        acc = None
        for ky in range(3):
            for kx in range(3):
                k = ky * 3 + kx
                off = (ky - 1) * width + (kx - 1)
                tap = shift_lanes(v, off) * mask_ref[k]       # (C, HW) * (1, HW)
                contrib = jnp.dot(w_taps_ref[k], tap,
                                  preferred_element_type=jnp.float32)
                acc = contrib if acc is None else acc + contrib
        return acc + bias_col

    def group_norm(v, gamma_col, beta_col):
        # Per-(group) mean / E[x^2] via one tiny matmul with the group-mixing
        # matrix (entries 1/(group_size*HW) for same-group channel pairs).
        s1 = jnp.sum(v, axis=1, keepdims=True)                # (C_out, 1)
        s2 = jnp.sum(v * v, axis=1, keepdims=True)            # (C_out, 1)
        mu = jnp.dot(gmix_ref[...], s1, preferred_element_type=jnp.float32)
        ex2 = jnp.dot(gmix_ref[...], s2, preferred_element_type=jnp.float32)
        inv = lax.rsqrt(ex2 - mu * mu + eps)
        return (v - mu) * inv * gamma_col + beta_col

    # ---- time-embedding MLP: SiLU -> Linear(T, 2*C_out), split scale/shift ----
    z = silu(t_ref[...])                                                  # (1, T)
    mlp = jnp.dot(z, wm_ref[...], preferred_element_type=jnp.float32) + bm_ref[...]
    rr = lax.broadcasted_iota(jnp.int32, (c_out, 2 * c_out), 0)
    cc = lax.broadcasted_iota(jnp.int32, (c_out, 2 * c_out), 1)
    # Row->column conversion without transposes: one-hot select + lane-reduce.
    scale = jnp.sum(jnp.where(cc == rr, mlp, 0.0), axis=1, keepdims=True)          # (C_out,1)
    shift = jnp.sum(jnp.where(cc == rr + c_out, mlp, 0.0), axis=1, keepdims=True)  # (C_out,1)

    # ---- block1: conv -> GN -> scale/shift -> SiLU ----
    h = conv3x3(x, w1_ref, b1_ref[...])
    h = group_norm(h, g1_ref[...], bt1_ref[...])
    h = h * (scale + 1.0) + shift
    h = silu(h)

    # ---- block2: conv -> GN -> SiLU ----
    h = conv3x3(h, w2_ref, b2_ref[...])
    h = group_norm(h, g2_ref[...], bt2_ref[...])
    h = silu(h)

    # ---- residual 1x1 conv, single full-block lane-dense store ----
    res = jnp.dot(wr_ref[...], x, preferred_element_type=jnp.float32) + br_ref[...]
    o_ref[...] = h + res


# --------------------------------------------------------------------------
# Wrapper: trace-time constant prep + pallas_call
# --------------------------------------------------------------------------
@functools.partial(jax.jit, static_argnames=("groups",))
def resnet_block_forward(x, time_emb, params, *, groups):
    """x: (B, C_in, H, W) f32; time_emb: (B, T) f32; params: PyTorch-layout weights."""
    b, c_in, hgt, wid = x.shape
    hw = hgt * wid
    c_out = params["w1"].shape[0]
    assert c_out % groups == 0
    gs = c_out // groups
    f32 = jnp.float32

    col = lambda v: jnp.asarray(v, f32).reshape(-1, 1)

    x_flat = jnp.asarray(x, f32).reshape(b, c_in, hw)         # lane-dense spatial
    t3 = jnp.asarray(time_emb, f32).reshape(b, 1, -1)
    t_dim = t3.shape[-1]

    # Conv weights as 9 taps: (ky*3+kx, C_out, C_prev)  -- layout plumbing, free.
    def taps(w):
        w = jnp.asarray(w, f32)
        return jnp.transpose(w, (2, 3, 0, 1)).reshape(9, w.shape[0], w.shape[1])

    w1_t, w2_t = taps(params["w1"]), taps(params["w2"])

    # Per-tap validity masks for "same" padding (trace-time numpy constants).
    ys, xs = np.divmod(np.arange(hw), wid)
    masks = np.zeros((9, 1, hw), np.float32)
    for ky in range(3):
        for kx in range(3):
            dy, dx = ky - 1, kx - 1
            ok = (ys + dy >= 0) & (ys + dy < hgt) & (xs + dx >= 0) & (xs + dx < wid)
            masks[ky * 3 + kx, 0] = ok
    masks = jnp.asarray(masks)

    # Group-mean mixing matrix: gmix @ per-channel sums == per-channel group means.
    gmix = np.zeros((c_out, c_out), np.float32)
    for g in range(groups):
        gmix[g * gs:(g + 1) * gs, g * gs:(g + 1) * gs] = 1.0 / (gs * hw)
    gmix = jnp.asarray(gmix)

    # Residual 1x1 conv (identity when dim == dim_out, matching nn.Identity).
    if "w_res" in params:
        w_res = jnp.asarray(params["w_res"], f32).reshape(c_out, c_in)
        b_res = col(params["b_res"])
    else:
        w_res = jnp.eye(c_out, dtype=f32)
        b_res = jnp.zeros((c_out, 1), f32)

    wm = jnp.asarray(params["w_mlp"], f32).T                  # (T, 2*C_out)
    bm = jnp.asarray(params["b_mlp"], f32).reshape(1, -1)

    kernel = functools.partial(_resnet_block_kernel, width=wid, eps=1e-5)

    const3 = lambda s: pl.BlockSpec(s, lambda i: (0, 0, 0))
    const2 = lambda s: pl.BlockSpec(s, lambda i: (0, 0))

    out_flat = pl.pallas_call(
        kernel,
        out_shape=jax.ShapeDtypeStruct((b, c_out, hw), f32),
        grid=(b,),
        in_specs=[
            pl.BlockSpec((None, c_in, hw), lambda i: (i, 0, 0)),    # x
            pl.BlockSpec((None, 1, t_dim), lambda i: (i, 0, 0)),    # time_emb
            const3((9, 1, hw)),                                     # tap masks
            const3((9, c_out, c_in)),                               # w1 taps
            const2((c_out, 1)), const2((c_out, 1)), const2((c_out, 1)),   # b1, g1, beta1
            const2((t_dim, 2 * c_out)), const2((1, 2 * c_out)),     # mlp W^T, mlp b
            const3((9, c_out, c_out)),                              # w2 taps
            const2((c_out, 1)), const2((c_out, 1)), const2((c_out, 1)),   # b2, g2, beta2
            const2((c_out, c_in)), const2((c_out, 1)),              # res W, res b
            const2((c_out, c_out)),                                 # group-mix matrix
        ],
        out_specs=pl.BlockSpec((None, c_out, hw), lambda i: (i, 0, 0)),
        compiler_params=pltpu.CompilerParams(
            dimension_semantics=("parallel",)),
    )(x_flat, t3, masks,
      w1_t, col(params["b1"]), col(params["g1"]), col(params["beta1"]),
      wm, bm,
      w2_t, col(params["b2"]), col(params["g2"]), col(params["beta2"]),
      w_res, b_res, gmix)

    return out_flat.reshape(b, c_out, hgt, wid)


# --------------------------------------------------------------------------
# Pure-JAX (XLA) reference for correctness checking
# --------------------------------------------------------------------------
def _reference_resnet_block(x, time_emb, params, groups):
    hp = lax.Precision.HIGHEST
    f32 = jnp.float32
    x = x.astype(f32)

    def silu(v):
        return v * jax.nn.sigmoid(v)

    def conv3x3(v, w, bias):
        out = lax.conv_general_dilated(
            v, jnp.asarray(w, f32), window_strides=(1, 1), padding="SAME",
            dimension_numbers=("NCHW", "OIHW", "NCHW"), precision=hp)
        return out + jnp.asarray(bias, f32)[None, :, None, None]

    def group_norm(v, gamma, beta):
        b, c, hgt, wid = v.shape
        gs = c // groups
        vg = v.reshape(b, groups, gs, hgt, wid)
        mu = vg.mean(axis=(2, 3, 4), keepdims=True)
        var = vg.var(axis=(2, 3, 4), keepdims=True)
        vg = (vg - mu) * lax.rsqrt(var + 1e-5)
        v = vg.reshape(b, c, hgt, wid)
        return (v * jnp.asarray(gamma, f32)[None, :, None, None]
                + jnp.asarray(beta, f32)[None, :, None, None])

    c_out = params["w1"].shape[0]
    mlp = jnp.dot(silu(time_emb.astype(f32)), jnp.asarray(params["w_mlp"], f32).T,
                  precision=hp) + jnp.asarray(params["b_mlp"], f32)
    scale, shift = mlp[:, :c_out], mlp[:, c_out:]

    h = conv3x3(x, params["w1"], params["b1"])
    h = group_norm(h, params["g1"], params["beta1"])
    h = h * (scale[:, :, None, None] + 1.0) + shift[:, :, None, None]
    h = silu(h)
    h = conv3x3(h, params["w2"], params["b2"])
    h = group_norm(h, params["g2"], params["beta2"])
    h = silu(h)

    if "w_res" in params:
        wr = jnp.asarray(params["w_res"], f32).reshape(c_out, -1)
        res = jnp.einsum("oi,bihw->bohw", wr, x, precision=hp) \
            + jnp.asarray(params["b_res"], f32)[None, :, None, None]
    else:
        res = x
    return h + res


if __name__ == "__main__":
    B, C_IN, C_OUT, H, W = 2, 4, 8, 16, 16
    T_DIM, GROUPS = 32, 4

    keys = list(jax.random.split(jax.random.PRNGKey(0), 14))

    def rnd(shape, scale=1.0):
        return scale * jax.random.normal(keys.pop(0), shape, dtype=jnp.float32)

    x = rnd((B, C_IN, H, W))
    t = rnd((B, T_DIM))
    params = dict(
        w1=rnd((C_OUT, C_IN, 3, 3), 0.2), b1=rnd((C_OUT,), 0.1),
        g1=1.0 + rnd((C_OUT,), 0.1), beta1=rnd((C_OUT,), 0.1),
        w_mlp=rnd((2 * C_OUT, T_DIM), 0.1), b_mlp=rnd((2 * C_OUT,), 0.1),
        w2=rnd((C_OUT, C_OUT, 3, 3), 0.2), b2=rnd((C_OUT,), 0.1),
        g2=1.0 + rnd((C_OUT,), 0.1), beta2=rnd((C_OUT,), 0.1),
        w_res=rnd((C_OUT, C_IN, 1, 1), 0.2), b_res=rnd((C_OUT,), 0.1),
    )

    out = resnet_block_forward(x, t, params, groups=GROUPS)
    out = jax.block_until_ready(out)

    ref = _reference_resnet_block(x, t, params, GROUPS)
    assert out.shape == (B, C_OUT, H, W)
    assert out.dtype == jnp.float32
    err = float(jnp.max(jnp.abs(out - ref)))
    # f32 throughout; tolerance allows for MXU multi-pass f32 matmul vs XLA
    # conv-decomposition summation-order differences.
    assert err < 1e-2, f"mismatch vs reference: max abs err = {err}"
    print("KERNEL_OK")
</pallas_src>

<mosaic_0001>
module attributes {stable_mosaic.version = 11 : i64} {
  func.func @_resnet_block_kernel(%arg0: i32, %arg1: memref<1x4x256xf32, #tpu.memory_space<vmem>>, %arg2: memref<1x1x32xf32, #tpu.memory_space<vmem>>, %arg3: memref<9x1x256xf32, #tpu.memory_space<vmem>>, %arg4: memref<9x8x4xf32, #tpu.memory_space<vmem>>, %arg5: memref<8x1xf32, #tpu.memory_space<vmem>>, %arg6: memref<8x1xf32, #tpu.memory_space<vmem>>, %arg7: memref<8x1xf32, #tpu.memory_space<vmem>>, %arg8: memref<32x16xf32, #tpu.memory_space<vmem>>, %arg9: memref<1x16xf32, #tpu.memory_space<vmem>>, %arg10: memref<9x8x8xf32, #tpu.memory_space<vmem>>, %arg11: memref<8x1xf32, #tpu.memory_space<vmem>>, %arg12: memref<8x1xf32, #tpu.memory_space<vmem>>, %arg13: memref<8x1xf32, #tpu.memory_space<vmem>>, %arg14: memref<8x4xf32, #tpu.memory_space<vmem>>, %arg15: memref<8x1xf32, #tpu.memory_space<vmem>>, %arg16: memref<8x8xf32, #tpu.memory_space<vmem>>, %arg17: memref<1x8x256xf32, #tpu.memory_space<vmem>>) attributes {dimension_semantics = [#tpu.dimension_semantics<parallel>], iteration_bounds = array<i64: 2>, scalar_prefetch = 0 : i64, scratch_operands = 0 : i64, tpu.core_type = #tpu.core_type<tc>, window_params = [{transform_indices = @transform_0, window_bounds = array<i64: 1, 4, 256>}, {transform_indices = @transform_1, window_bounds = array<i64: 1, 1, 32>}, {pipeline_mode = #tpu.pipeline_mode<synchronous>, transform_indices = @transform_2, window_bounds = array<i64: 9, 1, 256>}, {pipeline_mode = #tpu.pipeline_mode<synchronous>, transform_indices = @transform_3, window_bounds = array<i64: 9, 8, 4>}, {pipeline_mode = #tpu.pipeline_mode<synchronous>, transform_indices = @transform_4, window_bounds = array<i64: 8, 1>}, {pipeline_mode = #tpu.pipeline_mode<synchronous>, transform_indices = @transform_5, window_bounds = array<i64: 8, 1>}, {pipeline_mode = #tpu.pipeline_mode<synchronous>, transform_indices = @transform_6, window_bounds = array<i64: 8, 1>}, {pipeline_mode = #tpu.pipeline_mode<synchronous>, transform_indices = @transform_7, window_bounds = array<i64: 32, 16>}, {pipeline_mode = #tpu.pipeline_mode<synchronous>, transform_indices = @transform_8, window_bounds = array<i64: 1, 16>}, {pipeline_mode = #tpu.pipeline_mode<synchronous>, transform_indices = @transform_9, window_bounds = array<i64: 9, 8, 8>}, {pipeline_mode = #tpu.pipeline_mode<synchronous>, transform_indices = @transform_10, window_bounds = array<i64: 8, 1>}, {pipeline_mode = #tpu.pipeline_mode<synchronous>, transform_indices = @transform_11, window_bounds = array<i64: 8, 1>}, {pipeline_mode = #tpu.pipeline_mode<synchronous>, transform_indices = @transform_12, window_bounds = array<i64: 8, 1>}, {pipeline_mode = #tpu.pipeline_mode<synchronous>, transform_indices = @transform_13, window_bounds = array<i64: 8, 4>}, {pipeline_mode = #tpu.pipeline_mode<synchronous>, transform_indices = @transform_14, window_bounds = array<i64: 8, 1>}, {pipeline_mode = #tpu.pipeline_mode<synchronous>, transform_indices = @transform_15, window_bounds = array<i64: 8, 8>}, {transform_indices = @transform_16, window_bounds = array<i64: 1, 8, 256>}]} {
    %c0 = arith.constant 0 : index
    %c0_0 = arith.constant 0 : index
    %c0_1 = arith.constant 0 : index
    %0 = vector.load %arg1[%c0, %c0_0, %c0_1] : memref<1x4x256xf32, #tpu.memory_space<vmem>>, vector<1x4x256xf32>
    %1 = vector.shape_cast %0 : vector<1x4x256xf32> to vector<4x256xf32>
    %c0_2 = arith.constant 0 : index
    %c0_3 = arith.constant 0 : index
    %c0_4 = arith.constant 0 : index
    %2 = vector.load %arg2[%c0_2, %c0_3, %c0_4] : memref<1x1x32xf32, #tpu.memory_space<vmem>>, vector<1x1x32xf32>
    %3 = vector.shape_cast %2 : vector<1x1x32xf32> to vector<1x32xf32>
    %cst = arith.constant 0.000000e+00 : f32
    %4 = vector.broadcast %cst : f32 to vector<1x32xf32>
    %5 = arith.subf %4, %3 : vector<1x32xf32>
    %6 = math.exp %5 : vector<1x32xf32>
    %cst_5 = arith.constant 1.000000e+00 : f32
    %7 = vector.broadcast %cst_5 : f32 to vector<1x32xf32>
    %8 = arith.addf %7, %6 : vector<1x32xf32>
    %cst_6 = arith.constant 1.000000e+00 : f32
    %9 = vector.broadcast %cst_6 : f32 to vector<1x32xf32>
    %10 = arith.divf %9, %8 : vector<1x32xf32>
    %11 = arith.mulf %3, %10 : vector<1x32xf32>
    %c0_7 = arith.constant 0 : index
    %c0_8 = arith.constant 0 : index
    %12 = vector.load %arg8[%c0_7, %c0_8] : memref<32x16xf32, #tpu.memory_space<vmem>>, vector<32x16xf32>
    %cst_9 = arith.constant dense<0.000000e+00> : vector<1x16xf32>
    %13 = tpu.matmul %11, %12, %cst_9 {dimension_numbers = #tpu.dot_dimension_numbers<[1], [0], [0], [1], [0, 0, 1, 1], [], []>} : vector<1x32xf32>, vector<32x16xf32>, vector<1x16xf32> -> vector<1x16xf32>
    %c0_10 = arith.constant 0 : index
    %c0_11 = arith.constant 0 : index
    %14 = vector.load %arg9[%c0_10, %c0_11] : memref<1x16xf32, #tpu.memory_space<vmem>>, vector<1x16xf32>
    %15 = arith.addf %13, %14 : vector<1x16xf32>
    %16 = tpu.iota {dimensions = array<i32: 0>} : vector<8x16xi32>
    %17 = tpu.iota {dimensions = array<i32: 1>} : vector<8x16xi32>
    %18 = arith.cmpi eq, %17, %16 : vector<8x16xi32>
    %cst_12 = arith.constant 0.000000e+00 : f32
    %19 = vector.shape_cast %15 : vector<1x16xf32> to vector<1x16xf32>
    %20 = vector.broadcast %19 : vector<1x16xf32> to vector<8x16xf32>
    %21 = vector.broadcast %cst_12 : f32 to vector<8x16xf32>
    %22 = arith.select %18, %20, %21 : vector<8x16xi1>, vector<8x16xf32>
    %cst_13 = arith.constant dense<0.000000e+00> : vector<8xf32>
    %23 = vector.multi_reduction <add>, %22, %cst_13 [1] : vector<8x16xf32> to vector<8xf32>
    %24 = vector.shape_cast %23 : vector<8xf32> to vector<8x1xf32>
    %c8_i32 = arith.constant 8 : i32
    %25 = vector.broadcast %c8_i32 : i32 to vector<8x16xi32>
    %26 = arith.addi %16, %25 : vector<8x16xi32>
    %27 = arith.cmpi eq, %17, %26 : vector<8x16xi32>
    %cst_14 = arith.constant 0.000000e+00 : f32
    %28 = vector.shape_cast %15 : vector<1x16xf32> to vector<1x16xf32>
    %29 = vector.broadcast %28 : vector<1x16xf32> to vector<8x16xf32>
    %30 = vector.broadcast %cst_14 : f32 to vector<8x16xf32>
    %31 = arith.select %27, %29, %30 : vector<8x16xi1>, vector<8x16xf32>
    %cst_15 = arith.constant dense<0.000000e+00> : vector<8xf32>
    %32 = vector.multi_reduction <add>, %31, %cst_15 [1] : vector<8x16xf32> to vector<8xf32>
    %33 = vector.shape_cast %32 : vector<8xf32> to vector<8x1xf32>
    %c0_16 = arith.constant 0 : index
    %c0_17 = arith.constant 0 : index
    %34 = vector.load %arg5[%c0_16, %c0_17] : memref<8x1xf32, #tpu.memory_space<vmem>>, vector<8x1xf32>
    %cst_18 = arith.constant 0.000000e+00 : f32
    %35 = vector.broadcast %cst_18 : f32 to vector<4x17xf32>
    %36 = vector.extract_strided_slice %1 {offsets = [0, 0], sizes = [4, 239], strides = [1, 1]} : vector<4x256xf32> to vector<4x239xf32>
    %37 = tpu.concatenate %35, %36 in 1 : vector<4x17xf32>, vector<4x239xf32> -> vector<4x256xf32>
    %c0_19 = arith.constant 0 : index
    %c0_20 = arith.constant 0 : index
    %c0_21 = arith.constant 0 : index
    %38 = vector.load %arg3[%c0_19, %c0_20, %c0_21] : memref<9x1x256xf32, #tpu.memory_space<vmem>>, vector<1x1x256xf32>
    %39 = vector.shape_cast %38 : vector<1x1x256xf32> to vector<1x256xf32>
    %40 = vector.broadcast %39 : vector<1x256xf32> to vector<4x256xf32>
    %41 = arith.mulf %37, %40 : vector<4x256xf32>
    %c0_22 = arith.constant 0 : index
    %c0_23 = arith.constant 0 : index
    %c0_24 = arith.constant 0 : index
    %42 = vector.load %arg4[%c0_22, %c0_23, %c0_24] : memref<9x8x4xf32, #tpu.memory_space<vmem>>, vector<1x8x4xf32>
    %43 = vector.shape_cast %42 : vector<1x8x4xf32> to vector<8x4xf32>
    %cst_25 = arith.constant dense<0.000000e+00> : vector<8x256xf32>
    %44 = tpu.matmul %43, %41, %cst_25 {dimension_numbers = #tpu.dot_dimension_numbers<[1], [0], [0], [1], [0, 0, 1, 1], [], []>} : vector<8x4xf32>, vector<4x256xf32>, vector<8x256xf32> -> vector<8x256xf32>
    %cst_26 = arith.constant 0.000000e+00 : f32
    %45 = vector.broadcast %cst_26 : f32 to vector<4x16xf32>
    %46 = vector.extract_strided_slice %1 {offsets = [0, 0], sizes = [4, 240], strides = [1, 1]} : vector<4x256xf32> to vector<4x240xf32>
    %47 = tpu.concatenate %45, %46 in 1 : vector<4x16xf32>, vector<4x240xf32> -> vector<4x256xf32>
    %c1 = arith.constant 1 : index
    %c0_27 = arith.constant 0 : index
    %c0_28 = arith.constant 0 : index
    %48 = vector.load %arg3[%c1, %c0_27, %c0_28] : memref<9x1x256xf32, #tpu.memory_space<vmem>>, vector<1x1x256xf32>
    %49 = vector.shape_cast %48 : vector<1x1x256xf32> to vector<1x256xf32>
    %50 = vector.broadcast %49 : vector<1x256xf32> to vector<4x256xf32>
    %51 = arith.mulf %47, %50 : vector<4x256xf32>
    %c1_29 = arith.constant 1 : index
    %c0_30 = arith.constant 0 : index
    %c0_31 = arith.constant 0 : index
    %52 = vector.load %arg4[%c1_29, %c0_30, %c0_31] : memref<9x8x4xf32, #tpu.memory_space<vmem>>, vector<1x8x4xf32>
    %53 = vector.shape_cast %52 : vector<1x8x4xf32> to vector<8x4xf32>
    %cst_32 = arith.constant dense<0.000000e+00> : vector<8x256xf32>
    %54 = tpu.matmul %53, %51, %cst_32 {dimension_numbers = #tpu.dot_dimension_numbers<[1], [0], [0], [1], [0, 0, 1, 1], [], []>} : vector<8x4xf32>, vector<4x256xf32>, vector<8x256xf32> -> vector<8x256xf32>
    %55 = arith.addf %44, %54 : vector<8x256xf32>
    %cst_33 = arith.constant 0.000000e+00 : f32
    %56 = vector.broadcast %cst_33 : f32 to vector<4x15xf32>
    %57 = vector.extract_strided_slice %1 {offsets = [0, 0], sizes = [4, 241], strides = [1, 1]} : vector<4x256xf32> to vector<4x241xf32>
    %58 = tpu.concatenate %56, %57 in 1 : vector<4x15xf32>, vector<4x241xf32> -> vector<4x256xf32>
    %c2 = arith.constant 2 : index
    %c0_34 = arith.constant 0 : index
    %c0_35 = arith.constant 0 : index
    %59 = vector.load %arg3[%c2, %c0_34, %c0_35] : memref<9x1x256xf32, #tpu.memory_space<vmem>>, vector<1x1x256xf32>
    %60 = vector.shape_cast %59 : vector<1x1x256xf32> to vector<1x256xf32>
    %61 = vector.broadcast %60 : vector<1x256xf32> to vector<4x256xf32>
    %62 = arith.mulf %58, %61 : vector<4x256xf32>
    %c2_36 = arith.constant 2 : index
    %c0_37 = arith.constant 0 : index
    %c0_38 = arith.constant 0 : index
    %63 = vector.load %arg4[%c2_36, %c0_37, %c0_38] : memref<9x8x4xf32, #tpu.memory_space<vmem>>, vector<1x8x4xf32>
    %64 = vector.shape_cast %63 : vector<1x8x4xf32> to vector<8x4xf32>
    %cst_39 = arith.constant dense<0.000000e+00> : vector<8x256xf32>
    %65 = tpu.matmul %64, %62, %cst_39 {dimension_numbers = #tpu.dot_dimension_numbers<[1], [0], [0], [1], [0, 0, 1, 1], [], []>} : vector<8x4xf32>, vector<4x256xf32>, vector<8x256xf32> -> vector<8x256xf32>
    %66 = arith.addf %55, %65 : vector<8x256xf32>
    %cst_40 = arith.constant 0.000000e+00 : f32
    %67 = vector.broadcast %cst_40 : f32 to vector<4x1xf32>
    %68 = vector.extract_strided_slice %1 {offsets = [0, 0], sizes = [4, 255], strides = [1, 1]} : vector<4x256xf32> to vector<4x255xf32>
    %69 = tpu.concatenate %67, %68 in 1 : vector<4x1xf32>, vector<4x255xf32> -> vector<4x256xf32>
    %c3 = arith.constant 3 : index
    %c0_41 = arith.constant 0 : index
    %c0_42 = arith.constant 0 : index
    %70 = vector.load %arg3[%c3, %c0_41, %c0_42] : memref<9x1x256xf32, #tpu.memory_space<vmem>>, vector<1x1x256xf32>
    %71 = vector.shape_cast %70 : vector<1x1x256xf32> to vector<1x256xf32>
    %72 = vector.broadcast %71 : vector<1x256xf32> to vector<4x256xf32>
    %73 = arith.mulf %69, %72 : vector<4x256xf32>
    %c3_43 = arith.constant 3 : index
    %c0_44 = arith.constant 0 : index
    %c0_45 = arith.constant 0 : index
    %74 = vector.load %arg4[%c3_43, %c0_44, %c0_45] : memref<9x8x4xf32, #tpu.memory_space<vmem>>, vector<1x8x4xf32>
    %75 = vector.shape_cast %74 : vector<1x8x4xf32> to vector<8x4xf32>
    %cst_46 = arith.constant dense<0.000000e+00> : vector<8x256xf32>
    %76 = tpu.matmul %75, %73, %cst_46 {dimension_numbers = #tpu.dot_dimension_numbers<[1], [0], [0], [1], [0, 0, 1, 1], [], []>} : vector<8x4xf32>, vector<4x256xf32>, vector<8x256xf32> -> vector<8x256xf32>
    %77 = arith.addf %66, %76 : vector<8x256xf32>
    %c4 = arith.constant 4 : index
    %c0_47 = arith.constant 0 : index
    %c0_48 = arith.constant 0 : index
    %78 = vector.load %arg3[%c4, %c0_47, %c0_48] : memref<9x1x256xf32, #tpu.memory_space<vmem>>, vector<1x1x256xf32>
    %79 = vector.shape_cast %78 : vector<1x1x256xf32> to vector<1x256xf32>
    %80 = vector.broadcast %79 : vector<1x256xf32> to vector<4x256xf32>
    %81 = arith.mulf %1, %80 : vector<4x256xf32>
    %c4_49 = arith.constant 4 : index
    %c0_50 = arith.constant 0 : index
    %c0_51 = arith.constant 0 : index
    %82 = vector.load %arg4[%c4_49, %c0_50, %c0_51] : memref<9x8x4xf32, #tpu.memory_space<vmem>>, vector<1x8x4xf32>
    %83 = vector.shape_cast %82 : vector<1x8x4xf32> to vector<8x4xf32>
    %cst_52 = arith.constant dense<0.000000e+00> : vector<8x256xf32>
    %84 = tpu.matmul %83, %81, %cst_52 {dimension_numbers = #tpu.dot_dimension_numbers<[1], [0], [0], [1], [0, 0, 1, 1], [], []>} : vector<8x4xf32>, vector<4x256xf32>, vector<8x256xf32> -> vector<8x256xf32>
    %85 = arith.addf %77, %84 : vector<8x256xf32>
    %cst_53 = arith.constant 0.000000e+00 : f32
    %86 = vector.broadcast %cst_53 : f32 to vector<4x1xf32>
    %87 = vector.extract_strided_slice %1 {offsets = [0, 1], sizes = [4, 255], strides = [1, 1]} : vector<4x256xf32> to vector<4x255xf32>
    %88 = tpu.concatenate %87, %86 in 1 : vector<4x255xf32>, vector<4x1xf32> -> vector<4x256xf32>
    %c5 = arith.constant 5 : index
    %c0_54 = arith.constant 0 : index
    %c0_55 = arith.constant 0 : index
    %89 = vector.load %arg3[%c5, %c0_54, %c0_55] : memref<9x1x256xf32, #tpu.memory_space<vmem>>, vector<1x1x256xf32>
    %90 = vector.shape_cast %89 : vector<1x1x256xf32> to vector<1x256xf32>
    %91 = vector.broadcast %90 : vector<1x256xf32> to vector<4x256xf32>
    %92 = arith.mulf %88, %91 : vector<4x256xf32>
    %c5_56 = arith.constant 5 : index
    %c0_57 = arith.constant 0 : index
    %c0_58 = arith.constant 0 : index
    %93 = vector.load %arg4[%c5_56, %c0_57, %c0_58] : memref<9x8x4xf32, #tpu.memory_space<vmem>>, vector<1x8x4xf32>
    %94 = vector.shape_cast %93 : vector<1x8x4xf32> to vector<8x4xf32>
    %cst_59 = arith.constant dense<0.000000e+00> : vector<8x256xf32>
    %95 = tpu.matmul %94, %92, %cst_59 {dimension_numbers = #tpu.dot_dimension_numbers<[1], [0], [0], [1], [0, 0, 1, 1], [], []>} : vector<8x4xf32>, vector<4x256xf32>, vector<8x256xf32> -> vector<8x256xf32>
    %96 = arith.addf %85, %95 : vector<8x256xf32>
    %cst_60 = arith.constant 0.000000e+00 : f32
    %97 = vector.broadcast %cst_60 : f32 to vector<4x15xf32>
    %98 = vector.extract_strided_slice %1 {offsets = [0, 15], sizes = [4, 241], strides = [1, 1]} : vector<4x256xf32> to vector<4x241xf32>
    %99 = tpu.concatenate %98, %97 in 1 : vector<4x241xf32>, vector<4x15xf32> -> vector<4x256xf32>
    %c6 = arith.constant 6 : index
    %c0_61 = arith.constant 0 : index
    %c0_62 = arith.constant 0 : index
    %100 = vector.load %arg3[%c6, %c0_61, %c0_62] : memref<9x1x256xf32, #tpu.memory_space<vmem>>, vector<1x1x256xf32>
    %101 = vector.shape_cast %100 : vector<1x1x256xf32> to vector<1x256xf32>
    %102 = vector.broadcast %101 : vector<1x256xf32> to vector<4x256xf32>
    %103 = arith.mulf %99, %102 : vector<4x256xf32>
    %c6_63 = arith.constant 6 : index
    %c0_64 = arith.constant 0 : index
    %c0_65 = arith.constant 0 : index
    %104 = vector.load %arg4[%c6_63, %c0_64, %c0_65] : memref<9x8x4xf32, #tpu.memory_space<vmem>>, vector<1x8x4xf32>
    %105 = vector.shape_cast %104 : vector<1x8x4xf32> to vector<8x4xf32>
    %cst_66 = arith.constant dense<0.000000e+00> : vector<8x256xf32>
    %106 = tpu.matmul %105, %103, %cst_66 {dimension_numbers = #tpu.dot_dimension_numbers<[1], [0], [0], [1], [0, 0, 1, 1], [], []>} : vector<8x4xf32>, vector<4x256xf32>, vector<8x256xf32> -> vector<8x256xf32>
    %107 = arith.addf %96, %106 : vector<8x256xf32>
    %cst_67 = arith.constant 0.000000e+00 : f32
    %108 = vector.broadcast %cst_67 : f32 to vector<4x16xf32>
    %109 = vector.extract_strided_slice %1 {offsets = [0, 16], sizes = [4, 240], strides = [1, 1]} : vector<4x256xf32> to vector<4x240xf32>
    %110 = tpu.concatenate %109, %108 in 1 : vector<4x240xf32>, vector<4x16xf32> -> vector<4x256xf32>
    %c7 = arith.constant 7 : index
    %c0_68 = arith.constant 0 : index
    %c0_69 = arith.constant 0 : index
    %111 = vector.load %arg3[%c7, %c0_68, %c0_69] : memref<9x1x256xf32, #tpu.memory_space<vmem>>, vector<1x1x256xf32>
    %112 = vector.shape_cast %111 : vector<1x1x256xf32> to vector<1x256xf32>
    %113 = vector.broadcast %112 : vector<1x256xf32> to vector<4x256xf32>
    %114 = arith.mulf %110, %113 : vector<4x256xf32>
    %c7_70 = arith.constant 7 : index
    %c0_71 = arith.constant 0 : index
    %c0_72 = arith.constant 0 : index
    %115 = vector.load %arg4[%c7_70, %c0_71, %c0_72] : memref<9x8x4xf32, #tpu.memory_space<vmem>>, vector<1x8x4xf32>
    %116 = vector.shape_cast %115 : vector<1x8x4xf32> to vector<8x4xf32>
    %cst_73 = arith.constant dense<0.000000e+00> : vector<8x256xf32>
    %117 = tpu.matmul %116, %114, %cst_73 {dimension_numbers = #tpu.dot_dimension_numbers<[1], [0], [0], [1], [0, 0, 1, 1], [], []>} : vector<8x4xf32>, vector<4x256xf32>, vector<8x256xf32> -> vector<8x256xf32>
    %118 = arith.addf %107, %117 : vector<8x256xf32>
    %cst_74 = arith.constant 0.000000e+00 : f32
    %119 = vector.broadcast %cst_74 : f32 to vector<4x17xf32>
    %120 = vector.extract_strided_slice %1 {offsets = [0, 17], sizes = [4, 239], strides = [1, 1]} : vector<4x256xf32> to vector<4x239xf32>
    %121 = tpu.concatenate %120, %119 in 1 : vector<4x239xf32>, vector<4x17xf32> -> vector<4x256xf32>
    %c8 = arith.constant 8 : index
    %c0_75 = arith.constant 0 : index
    %c0_76 = arith.constant 0 : index
    %122 = vector.load %arg3[%c8, %c0_75, %c0_76] : memref<9x1x256xf32, #tpu.memory_space<vmem>>, vector<1x1x256xf32>
    %123 = vector.shape_cast %122 : vector<1x1x256xf32> to vector<1x256xf32>
    %124 = vector.broadcast %123 : vector<1x256xf32> to vector<4x256xf32>
    %125 = arith.mulf %121, %124 : vector<4x256xf32>
    %c8_77 = arith.constant 8 : index
    %c0_78 = arith.constant 0 : index
    %c0_79 = arith.constant 0 : index
    %126 = vector.load %arg4[%c8_77, %c0_78, %c0_79] : memref<9x8x4xf32, #tpu.memory_space<vmem>>, vector<1x8x4xf32>
    %127 = vector.shape_cast %126 : vector<1x8x4xf32> to vector<8x4xf32>
    %cst_80 = arith.constant dense<0.000000e+00> : vector<8x256xf32>
    %128 = tpu.matmul %127, %125, %cst_80 {dimension_numbers = #tpu.dot_dimension_numbers<[1], [0], [0], [1], [0, 0, 1, 1], [], []>} : vector<8x4xf32>, vector<4x256xf32>, vector<8x256xf32> -> vector<8x256xf32>
    %129 = arith.addf %118, %128 : vector<8x256xf32>
    %130 = vector.broadcast %34 : vector<8x1xf32> to vector<8x256xf32>
    %131 = arith.addf %129, %130 : vector<8x256xf32>
    %c0_81 = arith.constant 0 : index
    %c0_82 = arith.constant 0 : index
    %132 = vector.load %arg6[%c0_81, %c0_82] : memref<8x1xf32, #tpu.memory_space<vmem>>, vector<8x1xf32>
    %c0_83 = arith.constant 0 : index
    %c0_84 = arith.constant 0 : index
    %133 = vector.load %arg7[%c0_83, %c0_84] : memref<8x1xf32, #tpu.memory_space<vmem>>, vector<8x1xf32>
    %cst_85 = arith.constant dense<0.000000e+00> : vector<8xf32>
    %134 = vector.multi_reduction <add>, %131, %cst_85 [1] : vector<8x256xf32> to vector<8xf32>
    %135 = vector.shape_cast %134 : vector<8xf32> to vector<8x1xf32>
    %136 = arith.mulf %131, %131 : vector<8x256xf32>
    %cst_86 = arith.constant dense<0.000000e+00> : vector<8xf32>
    %137 = vector.multi_reduction <add>, %136, %cst_86 [1] : vector<8x256xf32> to vector<8xf32>
    %138 = vector.shape_cast %137 : vector<8xf32> to vector<8x1xf32>
    %c0_87 = arith.constant 0 : index
    %c0_88 = arith.constant 0 : index
    %139 = vector.load %arg16[%c0_87, %c0_88] : memref<8x8xf32, #tpu.memory_space<vmem>>, vector<8x8xf32>
    %cst_89 = arith.constant dense<0.000000e+00> : vector<8x1xf32>
    %140 = tpu.matmul %139, %135, %cst_89 {dimension_numbers = #tpu.dot_dimension_numbers<[1], [0], [0], [1], [0, 0, 1, 1], [], []>} : vector<8x8xf32>, vector<8x1xf32>, vector<8x1xf32> -> vector<8x1xf32>
    %c0_90 = arith.constant 0 : index
    %c0_91 = arith.constant 0 : index
    %141 = vector.load %arg16[%c0_90, %c0_91] : memref<8x8xf32, #tpu.memory_space<vmem>>, vector<8x8xf32>
    %cst_92 = arith.constant dense<0.000000e+00> : vector<8x1xf32>
    %142 = tpu.matmul %141, %138, %cst_92 {dimension_numbers = #tpu.dot_dimension_numbers<[1], [0], [0], [1], [0, 0, 1, 1], [], []>} : vector<8x8xf32>, vector<8x1xf32>, vector<8x1xf32> -> vector<8x1xf32>
    %143 = arith.mulf %140, %140 : vector<8x1xf32>
    %144 = arith.subf %142, %143 : vector<8x1xf32>
    %cst_93 = arith.constant 9.99999974E-6 : f32
    %145 = vector.broadcast %cst_93 : f32 to vector<8x1xf32>
    %146 = arith.addf %144, %145 : vector<8x1xf32>
    %147 = math.rsqrt %146 : vector<8x1xf32>
    %148 = vector.broadcast %140 : vector<8x1xf32> to vector<8x256xf32>
    %149 = arith.subf %131, %148 : vector<8x256xf32>
    %150 = vector.broadcast %147 : vector<8x1xf32> to vector<8x256xf32>
    %151 = arith.mulf %149, %150 : vector<8x256xf32>
    %152 = vector.broadcast %132 : vector<8x1xf32> to vector<8x256xf32>
    %153 = arith.mulf %151, %152 : vector<8x256xf32>
    %154 = vector.broadcast %133 : vector<8x1xf32> to vector<8x256xf32>
    %155 = arith.addf %153, %154 : vector<8x256xf32>
    %cst_94 = arith.constant 1.000000e+00 : f32
    %156 = vector.broadcast %cst_94 : f32 to vector<8x1xf32>
    %157 = arith.addf %24, %156 : vector<8x1xf32>
    %158 = vector.broadcast %157 : vector<8x1xf32> to vector<8x256xf32>
    %159 = arith.mulf %155, %158 : vector<8x256xf32>
    %160 = vector.broadcast %33 : vector<8x1xf32> to vector<8x256xf32>
    %161 = arith.addf %159, %160 : vector<8x256xf32>
    %cst_95 = arith.constant 0.000000e+00 : f32
    %162 = vector.broadcast %cst_95 : f32 to vector<8x256xf32>
    %163 = arith.subf %162, %161 : vector<8x256xf32>
    %164 = math.exp %163 : vector<8x256xf32>
    %cst_96 = arith.constant 1.000000e+00 : f32
    %165 = vector.broadcast %cst_96 : f32 to vector<8x256xf32>
    %166 = arith.addf %165, %164 : vector<8x256xf32>
    %cst_97 = arith.constant 1.000000e+00 : f32
    %167 = vector.broadcast %cst_97 : f32 to vector<8x256xf32>
    %168 = arith.divf %167, %166 : vector<8x256xf32>
    %169 = arith.mulf %161, %168 : vector<8x256xf32>
    %c0_98 = arith.constant 0 : index
    %c0_99 = arith.constant 0 : index
    %170 = vector.load %arg11[%c0_98, %c0_99] : memref<8x1xf32, #tpu.memory_space<vmem>>, vector<8x1xf32>
    %cst_100 = arith.constant 0.000000e+00 : f32
    %171 = vector.broadcast %cst_100 : f32 to vector<8x17xf32>
    %172 = vector.extract_strided_slice %169 {offsets = [0, 0], sizes = [8, 239], strides = [1, 1]} : vector<8x256xf32> to vector<8x239xf32>
    %173 = tpu.concatenate %171, %172 in 1 : vector<8x17xf32>, vector<8x239xf32> -> vector<8x256xf32>
    %c0_101 = arith.constant 0 : index
    %c0_102 = arith.constant 0 : index
    %c0_103 = arith.constant 0 : index
    %174 = vector.load %arg3[%c0_101, %c0_102, %c0_103] : memref<9x1x256xf32, #tpu.memory_space<vmem>>, vector<1x1x256xf32>
    %175 = vector.shape_cast %174 : vector<1x1x256xf32> to vector<1x256xf32>
    %176 = vector.broadcast %175 : vector<1x256xf32> to vector<8x256xf32>
    %177 = arith.mulf %173, %176 : vector<8x256xf32>
    %c0_104 = arith.constant 0 : index
    %c0_105 = arith.constant 0 : index
    %c0_106 = arith.constant 0 : index
    %178 = vector.load %arg10[%c0_104, %c0_105, %c0_106] : memref<9x8x8xf32, #tpu.memory_space<vmem>>, vector<1x8x8xf32>
    %179 = vector.shape_cast %178 : vector<1x8x8xf32> to vector<8x8xf32>
    %cst_107 = arith.constant dense<0.000000e+00> : vector<8x256xf32>
    %180 = tpu.matmul %179, %177, %cst_107 {dimension_numbers = #tpu.dot_dimension_numbers<[1], [0], [0], [1], [0, 0, 1, 1], [], []>} : vector<8x8xf32>, vector<8x256xf32>, vector<8x256xf32> -> vector<8x256xf32>
    %cst_108 = arith.constant 0.000000e+00 : f32
    %181 = vector.broadcast %cst_108 : f32 to vector<8x16xf32>
    %182 = vector.extract_strided_slice %169 {offsets = [0, 0], sizes = [8, 240], strides = [1, 1]} : vector<8x256xf32> to vector<8x240xf32>
    %183 = tpu.concatenate %181, %182 in 1 : vector<8x16xf32>, vector<8x240xf32> -> vector<8x256xf32>
    %c1_109 = arith.constant 1 : index
    %c0_110 = arith.constant 0 : index
    %c0_111 = arith.constant 0 : index
    %184 = vector.load %arg3[%c1_109, %c0_110, %c0_111] : memref<9x1x256xf32, #tpu.memory_space<vmem>>, vector<1x1x256xf32>
    %185 = vector.shape_cast %184 : vector<1x1x256xf32> to vector<1x256xf32>
    %186 = vector.broadcast %185 : vector<1x256xf32> to vector<8x256xf32>
    %187 = arith.mulf %183, %186 : vector<8x256xf32>
    %c1_112 = arith.constant 1 : index
    %c0_113 = arith.constant 0 : index
    %c0_114 = arith.constant 0 : index
    %188 = vector.load %arg10[%c1_112, %c0_113, %c0_114] : memref<9x8x8xf32, #tpu.memory_space<vmem>>, vector<1x8x8xf32>
    %189 = vector.shape_cast %188 : vector<1x8x8xf32> to vector<8x8xf32>
    %cst_115 = arith.constant dense<0.000000e+00> : vector<8x256xf32>
    %190 = tpu.matmul %189, %187, %cst_115 {dimension_numbers = #tpu.dot_dimension_numbers<[1], [0], [0], [1], [0, 0, 1, 1], [], []>} : vector<8x8xf32>, vector<8x256xf32>, vector<8x256xf32> -> vector<8x256xf32>
    %191 = arith.addf %180, %190 : vector<8x256xf32>
    %cst_116 = arith.constant 0.000000e+00 : f32
    %192 = vector.broadcast %cst_116 : f32 to vector<8x15xf32>
    %193 = vector.extract_strided_slice %169 {offsets = [0, 0], sizes = [8, 241], strides = [1, 1]} : vector<8x256xf32> to vector<8x241xf32>
    %194 = tpu.concatenate %192, %193 in 1 : vector<8x15xf32>, vector<8x241xf32> -> vector<8x256xf32>
    %c2_117 = arith.constant 2 : index
    %c0_118 = arith.constant 0 : index
    %c0_119 = arith.constant 0 : index
    %195 = vector.load %arg3[%c2_117, %c0_118, %c0_119] : memref<9x1x256xf32, #tpu.memory_space<vmem>>, vector<1x1x256xf32>
    %196 = vector.shape_cast %195 : vector<1x1x256xf32> to vector<1x256xf32>
    %197 = vector.broadcast %196 : vector<1x256xf32> to vector<8x256xf32>
    %198 = arith.mulf %194, %197 : vector<8x256xf32>
    %c2_120 = arith.constant 2 : index
    %c0_121 = arith.constant 0 : index
    %c0_122 = arith.constant 0 : index
    %199 = vector.load %arg10[%c2_120, %c0_121, %c0_122] : memref<9x8x8xf32, #tpu.memory_space<vmem>>, vector<1x8x8xf32>
    %200 = vector.shape_cast %199 : vector<1x8x8xf32> to vector<8x8xf32>
    %cst_123 = arith.constant dense<0.000000e+00> : vector<8x256xf32>
    %201 = tpu.matmul %200, %198, %cst_123 {dimension_numbers = #tpu.dot_dimension_numbers<[1], [0], [0], [1], [0, 0, 1, 1], [], []>} : vector<8x8xf32>, vector<8x256xf32>, vector<8x256xf32> -> vector<8x256xf32>
    %202 = arith.addf %191, %201 : vector<8x256xf32>
    %cst_124 = arith.constant 0.000000e+00 : f32
    %203 = vector.broadcast %cst_124 : f32 to vector<8x1xf32>
    %204 = vector.extract_strided_slice %169 {offsets = [0, 0], sizes = [8, 255], strides = [1, 1]} : vector<8x256xf32> to vector<8x255xf32>
    %205 = tpu.concatenate %203, %204 in 1 : vector<8x1xf32>, vector<8x255xf32> -> vector<8x256xf32>
    %c3_125 = arith.constant 3 : index
    %c0_126 = arith.constant 0 : index
    %c0_127 = arith.constant 0 : index
    %206 = vector.load %arg3[%c3_125, %c0_126, %c0_127] : memref<9x1x256xf32, #tpu.memory_space<vmem>>, vector<1x1x256xf32>
    %207 = vector.shape_cast %206 : vector<1x1x256xf32> to vector<1x256xf32>
    %208 = vector.broadcast %207 : vector<1x256xf32> to vector<8x256xf32>
    %209 = arith.mulf %205, %208 : vector<8x256xf32>
    %c3_128 = arith.constant 3 : index
    %c0_129 = arith.constant 0 : index
    %c0_130 = arith.constant 0 : index
    %210 = vector.load %arg10[%c3_128, %c0_129, %c0_130] : memref<9x8x8xf32, #tpu.memory_space<vmem>>, vector<1x8x8xf32>
    %211 = vector.shape_cast %210 : vector<1x8x8xf32> to vector<8x8xf32>
    %cst_131 = arith.constant dense<0.000000e+00> : vector<8x256xf32>
    %212 = tpu.matmul %211, %209, %cst_131 {dimension_numbers = #tpu.dot_dimension_numbers<[1], [0], [0], [1], [0, 0, 1, 1], [], []>} : vector<8x8xf32>, vector<8x256xf32>, vector<8x256xf32> -> vector<8x256xf32>
    %213 = arith.addf %202, %212 : vector<8x256xf32>
    %c4_132 = arith.constant 4 : index
    %c0_133 = arith.constant 0 : index
    %c0_134 = arith.constant 0 : index
    %214 = vector.load %arg3[%c4_132, %c0_133, %c0_134] : memref<9x1x256xf32, #tpu.memory_space<vmem>>, vector<1x1x256xf32>
    %215 = vector.shape_cast %214 : vector<1x1x256xf32> to vector<1x256xf32>
    %216 = vector.broadcast %215 : vector<1x256xf32> to vector<8x256xf32>
    %217 = arith.mulf %169, %216 : vector<8x256xf32>
    %c4_135 = arith.constant 4 : index
    %c0_136 = arith.constant 0 : index
    %c0_137 = arith.constant 0 : index
    %218 = vector.load %arg10[%c4_135, %c0_136, %c0_137] : memref<9x8x8xf32, #tpu.memory_space<vmem>>, vector<1x8x8xf32>
    %219 = vector.shape_cast %218 : vector<1x8x8xf32> to vector<8x8xf32>
    %cst_138 = arith.constant dense<0.000000e+00> : vector<8x256xf32>
    %220 = tpu.matmul %219, %217, %cst_138 {dimension_numbers = #tpu.dot_dimension_numbers<[1], [0], [0], [1], [0, 0, 1, 1], [], []>} : vector<8x8xf32>, vector<8x256xf32>, vector<8x256xf32> -> vector<8x256xf32>
    %221 = arith.addf %213, %220 : vector<8x256xf32>
    %cst_139 = arith.constant 0.000000e+00 : f32
    %222 = vector.broadcast %cst_139 : f32 to vector<8x1xf32>
    %223 = vector.extract_strided_slice %169 {offsets = [0, 1], sizes = [8, 255], strides = [1, 1]} : vector<8x256xf32> to vector<8x255xf32>
    %224 = tpu.concatenate %223, %222 in 1 : vector<8x255xf32>, vector<8x1xf32> -> vector<8x256xf32>
    %c5_140 = arith.constant 5 : index
    %c0_141 = arith.constant 0 : index
    %c0_142 = arith.constant 0 : index
    %225 = vector.load %arg3[%c5_140, %c0_141, %c0_142] : memref<9x1x256xf32, #tpu.memory_space<vmem>>, vector<1x1x256xf32>
    %226 = vector.shape_cast %225 : vector<1x1x256xf32> to vector<1x256xf32>
    %227 = vector.broadcast %226 : vector<1x256xf32> to vector<8x256xf32>
    %228 = arith.mulf %224, %227 : vector<8x256xf32>
    %c5_143 = arith.constant 5 : index
    %c0_144 = arith.constant 0 : index
    %c0_145 = arith.constant 0 : index
    %229 = vector.load %arg10[%c5_143, %c0_144, %c0_145] : memref<9x8x8xf32, #tpu.memory_space<vmem>>, vector<1x8x8xf32>
    %230 = vector.shape_cast %229 : vector<1x8x8xf32> to vector<8x8xf32>
    %cst_146 = arith.constant dense<0.000000e+00> : vector<8x256xf32>
    %231 = tpu.matmul %230, %228, %cst_146 {dimension_numbers = #tpu.dot_dimension_numbers<[1], [0], [0], [1], [0, 0, 1, 1], [], []>} : vector<8x8xf32>, vector<8x256xf32>, vector<8x256xf32> -> vector<8x256xf32>
    %232 = arith.addf %221, %231 : vector<8x256xf32>
    %cst_147 = arith.constant 0.000000e+00 : f32
    %233 = vector.broadcast %cst_147 : f32 to vector<8x15xf32>
    %234 = vector.extract_strided_slice %169 {offsets = [0, 15], sizes = [8, 241], strides = [1, 1]} : vector<8x256xf32> to vector<8x241xf32>
    %235 = tpu.concatenate %234, %233 in 1 : vector<8x241xf32>, vector<8x15xf32> -> vector<8x256xf32>
    %c6_148 = arith.constant 6 : index
    %c0_149 = arith.constant 0 : index
    %c0_150 = arith.constant 0 : index
    %236 = vector.load %arg3[%c6_148, %c0_149, %c0_150] : memref<9x1x256xf32, #tpu.memory_space<vmem>>, vector<1x1x256xf32>
    %237 = vector.shape_cast %236 : vector<1x1x256xf32> to vector<1x256xf32>
    %238 = vector.broadcast %237 : vector<1x256xf32> to vector<8x256xf32>
    %239 = arith.mulf %235, %238 : vector<8x256xf32>
    %c6_151 = arith.constant 6 : index
    %c0_152 = arith.constant 0 : index
    %c0_153 = arith.constant 0 : index
    %240 = vector.load %arg10[%c6_151, %c0_152, %c0_153] : memref<9x8x8xf32, #tpu.memory_space<vmem>>, vector<1x8x8xf32>
    %241 = vector.shape_cast %240 : vector<1x8x8xf32> to vector<8x8xf32>
    %cst_154 = arith.constant dense<0.000000e+00> : vector<8x256xf32>
    %242 = tpu.matmul %241, %239, %cst_154 {dimension_numbers = #tpu.dot_dimension_numbers<[1], [0], [0], [1], [0, 0, 1, 1], [], []>} : vector<8x8xf32>, vector<8x256xf32>, vector<8x256xf32> -> vector<8x256xf32>
    %243 = arith.addf %232, %242 : vector<8x256xf32>
    %cst_155 = arith.constant 0.000000e+00 : f32
    %244 = vector.broadcast %cst_155 : f32 to vector<8x16xf32>
    %245 = vector.extract_strided_slice %169 {offsets = [0, 16], sizes = [8, 240], strides = [1, 1]} : vector<8x256xf32> to vector<8x240xf32>
    %246 = tpu.concatenate %245, %244 in 1 : vector<8x240xf32>, vector<8x16xf32> -> vector<8x256xf32>
    %c7_156 = arith.constant 7 : index
    %c0_157 = arith.constant 0 : index
    %c0_158 = arith.constant 0 : index
    %247 = vector.load %arg3[%c7_156, %c0_157, %c0_158] : memref<9x1x256xf32, #tpu.memory_space<vmem>>, vector<1x1x256xf32>
    %248 = vector.shape_cast %247 : vector<1x1x256xf32> to vector<1x256xf32>
    %249 = vector.broadcast %248 : vector<1x256xf32> to vector<8x256xf32>
    %250 = arith.mulf %246, %249 : vector<8x256xf32>
    %c7_159 = arith.constant 7 : index
    %c0_160 = arith.constant 0 : index
    %c0_161 = arith.constant 0 : index
    %251 = vector.load %arg10[%c7_159, %c0_160, %c0_161] : memref<9x8x8xf32, #tpu.memory_space<vmem>>, vector<1x8x8xf32>
    %252 = vector.shape_cast %251 : vector<1x8x8xf32> to vector<8x8xf32>
    %cst_162 = arith.constant dense<0.000000e+00> : vector<8x256xf32>
    %253 = tpu.matmul %252, %250, %cst_162 {dimension_numbers = #tpu.dot_dimension_numbers<[1], [0], [0], [1], [0, 0, 1, 1], [], []>} : vector<8x8xf32>, vector<8x256xf32>, vector<8x256xf32> -> vector<8x256xf32>
    %254 = arith.addf %243, %253 : vector<8x256xf32>
    %cst_163 = arith.constant 0.000000e+00 : f32
    %255 = vector.broadcast %cst_163 : f32 to vector<8x17xf32>
    %256 = vector.extract_strided_slice %169 {offsets = [0, 17], sizes = [8, 239], strides = [1, 1]} : vector<8x256xf32> to vector<8x239xf32>
    %257 = tpu.concatenate %256, %255 in 1 : vector<8x239xf32>, vector<8x17xf32> -> vector<8x256xf32>
    %c8_164 = arith.constant 8 : index
    %c0_165 = arith.constant 0 : index
    %c0_166 = arith.constant 0 : index
    %258 = vector.load %arg3[%c8_164, %c0_165, %c0_166] : memref<9x1x256xf32, #tpu.memory_space<vmem>>, vector<1x1x256xf32>
    %259 = vector.shape_cast %258 : vector<1x1x256xf32> to vector<1x256xf32>
    %260 = vector.broadcast %259 : vector<1x256xf32> to vector<8x256xf32>
    %261 = arith.mulf %257, %260 : vector<8x256xf32>
    %c8_167 = arith.constant 8 : index
    %c0_168 = arith.constant 0 : index
    %c0_169 = arith.constant 0 : index
    %262 = vector.load %arg10[%c8_167, %c0_168, %c0_169] : memref<9x8x8xf32, #tpu.memory_space<vmem>>, vector<1x8x8xf32>
    %263 = vector.shape_cast %262 : vector<1x8x8xf32> to vector<8x8xf32>
    %cst_170 = arith.constant dense<0.000000e+00> : vector<8x256xf32>
    %264 = tpu.matmul %263, %261, %cst_170 {dimension_numbers = #tpu.dot_dimension_numbers<[1], [0], [0], [1], [0, 0, 1, 1], [], []>} : vector<8x8xf32>, vector<8x256xf32>, vector<8x256xf32> -> vector<8x256xf32>
    %265 = arith.addf %254, %264 : vector<8x256xf32>
    %266 = vector.broadcast %170 : vector<8x1xf32> to vector<8x256xf32>
    %267 = arith.addf %265, %266 : vector<8x256xf32>
    %c0_171 = arith.constant 0 : index
    %c0_172 = arith.constant 0 : index
    %268 = vector.load %arg12[%c0_171, %c0_172] : memref<8x1xf32, #tpu.memory_space<vmem>>, vector<8x1xf32>
    %c0_173 = arith.constant 0 : index
    %c0_174 = arith.constant 0 : index
    %269 = vector.load %arg13[%c0_173, %c0_174] : memref<8x1xf32, #tpu.memory_space<vmem>>, vector<8x1xf32>
    %cst_175 = arith.constant dense<0.000000e+00> : vector<8xf32>
    %270 = vector.multi_reduction <add>, %267, %cst_175 [1] : vector<8x256xf32> to vector<8xf32>
    %271 = vector.shape_cast %270 : vector<8xf32> to vector<8x1xf32>
    %272 = arith.mulf %267, %267 : vector<8x256xf32>
    %cst_176 = arith.constant dense<0.000000e+00> : vector<8xf32>
    %273 = vector.multi_reduction <add>, %272, %cst_176 [1] : vector<8x256xf32> to vector<8xf32>
    %274 = vector.shape_cast %273 : vector<8xf32> to vector<8x1xf32>
    %c0_177 = arith.constant 0 : index
    %c0_178 = arith.constant 0 : index
    %275 = vector.load %arg16[%c0_177, %c0_178] : memref<8x8xf32, #tpu.memory_space<vmem>>, vector<8x8xf32>
    %cst_179 = arith.constant dense<0.000000e+00> : vector<8x1xf32>
    %276 = tpu.matmul %275, %271, %cst_179 {dimension_numbers = #tpu.dot_dimension_numbers<[1], [0], [0], [1], [0, 0, 1, 1], [], []>} : vector<8x8xf32>, vector<8x1xf32>, vector<8x1xf32> -> vector<8x1xf32>
    %c0_180 = arith.constant 0 : index
    %c0_181 = arith.constant 0 : index
    %277 = vector.load %arg16[%c0_180, %c0_181] : memref<8x8xf32, #tpu.memory_space<vmem>>, vector<8x8xf32>
    %cst_182 = arith.constant dense<0.000000e+00> : vector<8x1xf32>
    %278 = tpu.matmul %277, %274, %cst_182 {dimension_numbers = #tpu.dot_dimension_numbers<[1], [0], [0], [1], [0, 0, 1, 1], [], []>} : vector<8x8xf32>, vector<8x1xf32>, vector<8x1xf32> -> vector<8x1xf32>
    %279 = arith.mulf %276, %276 : vector<8x1xf32>
    %280 = arith.subf %278, %279 : vector<8x1xf32>
    %cst_183 = arith.constant 9.99999974E-6 : f32
    %281 = vector.broadcast %cst_183 : f32 to vector<8x1xf32>
    %282 = arith.addf %280, %281 : vector<8x1xf32>
    %283 = math.rsqrt %282 : vector<8x1xf32>
    %284 = vector.broadcast %276 : vector<8x1xf32> to vector<8x256xf32>
    %285 = arith.subf %267, %284 : vector<8x256xf32>
    %286 = vector.broadcast %283 : vector<8x1xf32> to vector<8x256xf32>
    %287 = arith.mulf %285, %286 : vector<8x256xf32>
    %288 = vector.broadcast %268 : vector<8x1xf32> to vector<8x256xf32>
    %289 = arith.mulf %287, %288 : vector<8x256xf32>
    %290 = vector.broadcast %269 : vector<8x1xf32> to vector<8x256xf32>
    %291 = arith.addf %289, %290 : vector<8x256xf32>
    %cst_184 = arith.constant 0.000000e+00 : f32
    %292 = vector.broadcast %cst_184 : f32 to vector<8x256xf32>
    %293 = arith.subf %292, %291 : vector<8x256xf32>
    %294 = math.exp %293 : vector<8x256xf32>
    %cst_185 = arith.constant 1.000000e+00 : f32
    %295 = vector.broadcast %cst_185 : f32 to vector<8x256xf32>
    %296 = arith.addf %295, %294 : vector<8x256xf32>
    %cst_186 = arith.constant 1.000000e+00 : f32
    %297 = vector.broadcast %cst_186 : f32 to vector<8x256xf32>
    %298 = arith.divf %297, %296 : vector<8x256xf32>
    %299 = arith.mulf %291, %298 : vector<8x256xf32>
    %c0_187 = arith.constant 0 : index
    %c0_188 = arith.constant 0 : index
    %300 = vector.load %arg14[%c0_187, %c0_188] : memref<8x4xf32, #tpu.memory_space<vmem>>, vector<8x4xf32>
    %cst_189 = arith.constant dense<0.000000e+00> : vector<8x256xf32>
    %301 = tpu.matmul %300, %1, %cst_189 {dimension_numbers = #tpu.dot_dimension_numbers<[1], [0], [0], [1], [0, 0, 1, 1], [], []>} : vector<8x4xf32>, vector<4x256xf32>, vector<8x256xf32> -> vector<8x256xf32>
    %c0_190 = arith.constant 0 : index
    %c0_191 = arith.constant 0 : index
    %302 = vector.load %arg15[%c0_190, %c0_191] : memref<8x1xf32, #tpu.memory_space<vmem>>, vector<8x1xf32>
    %303 = vector.broadcast %302 : vector<8x1xf32> to vector<8x256xf32>
    %304 = arith.addf %301, %303 : vector<8x256xf32>
    %305 = arith.addf %299, %304 : vector<8x256xf32>
    %c0_192 = arith.constant 0 : index
    %c0_193 = arith.constant 0 : index
    %c0_194 = arith.constant 0 : index
    %306 = vector.load %arg17[%c0_192, %c0_193, %c0_194] : memref<1x8x256xf32, #tpu.memory_space<vmem>>, vector<1x8x256xf32>
    %307 = vector.shape_cast %306 : vector<1x8x256xf32> to vector<8x256xf32>
    %308 = vector.shape_cast %305 : vector<8x256xf32> to vector<1x8x256xf32>
    tpu.vector_store %arg17[%c0_192, %c0_193, %c0_194], %308 {strides = array<i32>} : memref<1x8x256xf32, #tpu.memory_space<vmem>>, vector<1x8x256xf32>,
    return
  }
  func.func @transform_0(%arg0: i32) -> (i32, i32, i32) {
    %c0_i32 = arith.constant 0 : i32
    %c0_i32_0 = arith.constant 0 : i32
    %c0_i32_1 = arith.constant 0 : i32
    return %arg0, %c0_i32, %c0_i32_0 : i32, i32, i32
  }
  func.func @transform_1(%arg0: i32) -> (i32, i32, i32) {
    %c0_i32 = arith.constant 0 : i32
    %c0_i32_0 = arith.constant 0 : i32
    %c0_i32_1 = arith.constant 0 : i32
    return %arg0, %c0_i32, %c0_i32_0 : i32, i32, i32
  }
  func.func @transform_2(%arg0: i32) -> (i32, i32, i32) {
    %c0_i32 = arith.constant 0 : i32
    %c0_i32_0 = arith.constant 0 : i32
    %c0_i32_1 = arith.constant 0 : i32
    %c0_i32_2 = arith.constant 0 : i32
    return %c0_i32, %c0_i32_0, %c0_i32_1 : i32, i32, i32
  }
  func.func @transform_3(%arg0: i32) -> (i32, i32, i32) {
    %c0_i32 = arith.constant 0 : i32
    %c0_i32_0 = arith.constant 0 : i32
    %c0_i32_1 = arith.constant 0 : i32
    %c0_i32_2 = arith.constant 0 : i32
    return %c0_i32, %c0_i32_0, %c0_i32_1 : i32, i32, i32
  }
  func.func @transform_4(%arg0: i32) -> (i32, i32) {
    %c0_i32 = arith.constant 0 : i32
    %c0_i32_0 = arith.constant 0 : i32
    %c0_i32_1 = arith.constant 0 : i32
    return %c0_i32, %c0_i32_0 : i32, i32
  }
  func.func @transform_5(%arg0: i32) -> (i32, i32) {
    %c0_i32 = arith.constant 0 : i32
    %c0_i32_0 = arith.constant 0 : i32
    %c0_i32_1 = arith.constant 0 : i32
    return %c0_i32, %c0_i32_0 : i32, i32
  }
  func.func @transform_6(%arg0: i32) -> (i32, i32) {
    %c0_i32 = arith.constant 0 : i32
    %c0_i32_0 = arith.constant 0 : i32
    %c0_i32_1 = arith.constant 0 : i32
    return %c0_i32, %c0_i32_0 : i32, i32
  }
  func.func @transform_7(%arg0: i32) -> (i32, i32) {
    %c0_i32 = arith.constant 0 : i32
    %c0_i32_0 = arith.constant 0 : i32
    %c0_i32_1 = arith.constant 0 : i32
    return %c0_i32, %c0_i32_0 : i32, i32
  }
  func.func @transform_8(%arg0: i32) -> (i32, i32) {
    %c0_i32 = arith.constant 0 : i32
    %c0_i32_0 = arith.constant 0 : i32
    %c0_i32_1 = arith.constant 0 : i32
    return %c0_i32, %c0_i32_0 : i32, i32
  }
  func.func @transform_9(%arg0: i32) -> (i32, i32, i32) {
    %c0_i32 = arith.constant 0 : i32
    %c0_i32_0 = arith.constant 0 : i32
    %c0_i32_1 = arith.constant 0 : i32
    %c0_i32_2 = arith.constant 0 : i32
    return %c0_i32, %c0_i32_0, %c0_i32_1 : i32, i32, i32
  }
  func.func @transform_10(%arg0: i32) -> (i32, i32) {
    %c0_i32 = arith.constant 0 : i32
    %c0_i32_0 = arith.constant 0 : i32
    %c0_i32_1 = arith.constant 0 : i32
    return %c0_i32, %c0_i32_0 : i32, i32
  }
  func.func @transform_11(%arg0: i32) -> (i32, i32) {
    %c0_i32 = arith.constant 0 : i32
    %c0_i32_0 = arith.constant 0 : i32
    %c0_i32_1 = arith.constant 0 : i32
    return %c0_i32, %c0_i32_0 : i32, i32
  }
  func.func @transform_12(%arg0: i32) -> (i32, i32) {
    %c0_i32 = arith.constant 0 : i32
    %c0_i32_0 = arith.constant 0 : i32
    %c0_i32_1 = arith.constant 0 : i32
    return %c0_i32, %c0_i32_0 : i32, i32
  }
  func.func @transform_13(%arg0: i32) -> (i32, i32) {
    %c0_i32 = arith.constant 0 : i32
    %c0_i32_0 = arith.constant 0 : i32
    %c0_i32_1 = arith.constant 0 : i32
    return %c0_i32, %c0_i32_0 : i32, i32
  }
  func.func @transform_14(%arg0: i32) -> (i32, i32) {
    %c0_i32 = arith.constant 0 : i32
    %c0_i32_0 = arith.constant 0 : i32
    %c0_i32_1 = arith.constant 0 : i32
    return %c0_i32, %c0_i32_0 : i32, i32
  }
  func.func @transform_15(%arg0: i32) -> (i32, i32) {
    %c0_i32 = arith.constant 0 : i32
    %c0_i32_0 = arith.constant 0 : i32
    %c0_i32_1 = arith.constant 0 : i32
    return %c0_i32, %c0_i32_0 : i32, i32
  }
  func.func @transform_16(%arg0: i32) -> (i32, i32, i32) {
    %c0_i32 = arith.constant 0 : i32
    %c0_i32_0 = arith.constant 0 : i32
    %c0_i32_1 = arith.constant 0 : i32
    return %arg0, %c0_i32, %c0_i32_0 : i32, i32, i32
  }
}

</mosaic_0001>

<bundles_post_ra>
// kernel: resnet_block_forward.1
= control target key start
LH: loop header
LB: loop body
LE: loop exit
PB: predicated region body
PF: predicated region fallthrough
CT: control target
= control target key end

     0   :  { %s2419_s21 = smov 0   ;;  %s2819_s0 = inlined_call_operand.vmem [shape: f32[2,4,256], index: 0, kind: input, shape index: {}]   ;;  %s2820_s1 = inlined_call_operand.vmem [shape: f32[2,1,32], index: 1, kind: input, shape index: {}]   ;;  %s2821_s2 = inlined_call_operand.vmem [shape: f32[9,1,256], index: 2, kind: input, shape index: {}]   ;;  %s2822_s3 = inlined_call_operand.vmem [shape: f32[9,8,4], index: 3, kind: input, shape index: {}]   ;;  %s2823_s4 = inlined_call_operand.vmem [shape: f32[8,1], index: 4, kind: input, shape index: {}]   ;;  %s2824_s5 = inlined_call_operand.vmem [shape: f32[8,1], index: 5, kind: input, shape index: {}]   ;;  %s2825_s6 = inlined_call_operand.vmem [shape: f32[8,1], index: 6, kind: input, shape index: {}]   ;;  %s2826_s7 = inlined_call_operand.vmem [shape: f32[32,16], index: 7, kind: input, shape index: {}]   ;;  %s2827_s8 = inlined_call_operand.vmem [shape: f32[1,16], index: 8, kind: input, shape index: {}]   ;;  %s2828_s9 = inlined_call_operand.vmem [shape: f32[9,8,8], index: 9, kind: input, shape index: {}]   ;;  %s2829_s10 = inlined_call_operand.vmem [shape: f32[8,1], index: 10, kind: input, shape index: {}]   ;;  %s2830_s11 = inlined_call_operand.vmem [shape: f32[8,1], index: 11, kind: input, shape index: {}]   ;;  %s2831_s12 = inlined_call_operand.vmem [shape: f32[8,1], index: 12, kind: input, shape index: {}]   ;;  %s2832_s13 = inlined_call_operand.vmem [shape: f32[8,4], index: 13, kind: input, shape index: {}]   ;;  %s2833_s14 = inlined_call_operand.vmem [shape: f32[8,1], index: 14, kind: input, shape index: {}]   ;;  %s2834_s15 = inlined_call_operand.vmem [shape: f32[8,8], index: 15, kind: input, shape index: {}]   ;;  %s2835_s16 = inlined_call_operand.vmem [shape: f32[2,8,256], index: 16, kind: output, shape index: {}]  }
   0x1   :  { %2847 = sst [smem:[#allocation2_spill]] %s2819_s0 }
   0x2 LB: > { %s2173_s22 = sadd.s32 4294967295, %s2323_s21   ;;  %p2177_p0 = scmp.ge.s32.totalorder %s2323_s21, 1  ;;  %s2323_s21 = sphi %s2419_s21, %s26_s21  }
   0x3   : > { %p470_p1 = scmp.lt.s32.totalorder %s2323_s21, 3 }
   0x5   : > { %p471_p2 = pnand %p2177_p0, %p470_p1 }
   0x6   : > { %p523_p3 = scmp.lt.s32.totalorder (!%p471_p2), %s2173_s22, 1  ;;  %s2848_s26 = sld [smem:[#allocation2_spill]] (!%p471_p2) }
   0x7   : > { %474 = sbr.rel (%p471_p2) target bundleno = 1534 (0x5fe), region = 84  ;;  %s2325_s28 = smov (!%p471_p2), 17  }
   0x8   : > { %s2326_s0 = smov (!%p471_p2), 16   ;;  %s2327_s17 = smov (!%p471_p2), 15  }
   0x9   : > { %s2842_s18 = smov (!%p471_p2), 1   ;;  %s2329_s19 = smov (!%p471_p2), 127  }
   0xa   : > { %s2836_s20 = smov (!%p471_p2), 113   ;;  %s2840_s24 = smov (!%p471_p2), 112  }
   0xc   : > { %s2860_s22 = smov (!%p523_p3, %s2173_s22), 1  ;;  %v2437_v3 = vld [vmem:[%s2821_s2 + $0x8] sm:$0x3]  ;;  %vm2845_vm0 = vcmask 1043456   ;;  %v561_v28 = vld [vmem:[%s2826_s7 + $0x18] sm:$0xff]  ;;  %v560_v29 = vld [vmem:[%s2826_s7 + $0x10] sm:$0xff] }
   0xd   : > { %s2271_s23 = sshll.u32 %s2860_s22, 3  ;;  %v901_v6 = vperm.slane %v2437_v3, 1  ;;  %v900_v7 = vperm.slane %v2437_v3, 0  ;;  %579 = vmatpush.msra.mxu0 %v561_v28  ;;  %v559_v32 = vld [vmem:[%s2826_s7 + $0x8] sm:$0xff]  ;;  %v558_v33 = vld [vmem:[%s2826_s7] sm:$0xff]  ;;  %vm613_vm3 = vcmask 138240  }
   0xe   : > { %s527_s27 = scalar_lea.vmem %s2848_s26, %s2271_s23  ;;  %s2838_s23 = smov 111   ;;  %v2484_v38 = vld [vmem:[%s2821_s2] sm:$0x3]  ;;  %vm2844_vm6 = vcmask 31744   ;;  %vm563_vm7 = vcmask 261120   ;;  %vm594_vm8 = vcmask 130048  }
   0xf   : > { %v536_v0 = vld [vmem:[%s527_s27] sm:$0xff]  ;;  %v902_v8 = vrot.slane %v901_v6, 4  ;;  %s530_s27 = scalar_lea.vmem %s2820_s1, %s2860_s22  ;;  %580 = vmatpush.msra.mxu0 %v560_v29  ;;  %v620_v42 = vperm.slane %v2484_v38, 0  ;;  %v621_v55 = vperm.slane %v2484_v38, 1  ;;  %vm756_vm9 = vcmask 121856   ;;  %s2849_s26 = smov 1  }
  0x10   : > { %606 = vst [vmem:[#allocation1] ss:$2 sm:$0xff] %v536_v0  ;;  %v537_v25 = vld [vmem:[%s530_s27] sm:$0x1]  ;;  %v2496_v51 = vld [vmem:[%s2821_s2 + $0x2] sm:$0x3] }
  0x11   : > { %v903_v11 = vsel %vm2845_vm0, %v900_v7, %v902_v8  ;;  %v538_v26 = vsub.f32 0.0, %v537_v25  ;;  %581 = vmatpush.msra.mxu0 %v559_v32  ;;  %v626_v49 = vld [vmem:[%s2822_s3] sm:$0xff]  ;;  %v642_v54 = vperm.slane %v2496_v51, 1  ;;  %v641_v56 = vperm.slane %v2496_v51, 0  ;;  %s2272_s27 = sshll.u32 %s2860_s22, 4 }
  0x12   : > { %v905_v12 = vmul.f32 %v903_v11, %v536_v0  ;;  %vm830_vm10 = vcmask 7168   ;;  %vm2846_vm11 = vcmask 1039360   ;;  %vm1042_vm12 = vcmask 924672  }
  0x13   : > { %v539_v27 = vmul.f32 1.442695, %v538_v26  ;;  %582 = vmatpush.msra.mxu0 %v558_v33  ;;  %v2573_v26 = vld [vmem:[%s2821_s2 + $0xa] sm:$0x3]  ;;  %vm1190_vm13 = vcmask 908288   ;;  %vm1116_vm14 = vcmask 916480  }
  0x14   : > { %v976_v32 = vperm.slane %v2573_v26, 0 }
  0x15   : > { %2293 = vpow2.f32 %v539_v27  ;;  %v977_v27 = vperm.slane %v2573_v26, 1 }
  0x17   : > { %v607_v1 = vld.sshfl [vmem:[#allocation1] sm:$0xff pattern:$0x75316420]  ;;  %v608_v2 = vld.sshfl [vmem:[#allocation1 + $0x8] sm:$0xff pattern:$0x75316420] }
  0x18   : > { %609 = vrot.lane.b32.xlu0 %v607_v1, %s2325_s28  ;;  %627 = vst [vmem:[#allocation1] ss:$2 sm:$0xff] %v536_v0 }
  0x1b   : > { %v2294_v30 = vpop.eup %2293 }
  0x1c   : > { %v541_v31 = vadd.f32 1.0, %v2294_v30 }
  0x1e   : > { %2295 = vrcp.f32 %v541_v31  ;;  %v553_v37 = vand.u32 2147483648, %v541_v31  ;;  %vm547_vm1 = vweird.f32 %v541_v31  ;;  %v551_v40 = vand.u32 2147483647, %v541_v31 }
  0x1f   : > { %v629_v4 = vld.sshfl [vmem:[#allocation1 + $0x8] sm:$0xff pattern:$0x75316420]  ;;  %v628_v5 = vld.sshfl [vmem:[#allocation1] sm:$0xff pattern:$0x75316420] }
  0x20   : > { %632 = vrot.lane.b32.xlu1 %v629_v4, %s2326_s0  ;;  %630 = vrot.lane.b32.xlu0 %v628_v5, %s2326_s0  ;;  %749 = vst [vmem:[#allocation1] ss:$2 sm:$0xff] %v536_v0  ;;  %v554_v43 = vor.u32 1.1754944e-38, %v553_v37  ;;  %vm552_vm5 = vcmp.eq.f32.partialorder %v551_v40, 8.507059e+37  ;;  %v604_v37 = vld [vmem:[%s2823_s4] sm:$0xff] }
  0x24   : > { %v2296_v34 = vpop.eup %2295 }
  0x25   : > { %v543_v35 = vmul.f32 %v2296_v34, %v541_v31  ;;  %vm548_vm2 = vweird.f32 %v2296_v34  ;;  %v2212_v31 = vld [vmem:[%s2822_s3 + $0x28] sm:$0xff] }
  0x26   : > { %vm549_vm4 = vmor %vm547_vm1, %vm548_vm2  ;;  %vm1275_vm2 = vcmask 64512  }
  0x27   : > { %v750_v9 = vld.sshfl [vmem:[#allocation1] sm:$0xff pattern:$0x75316420]  ;;  %v751_v10 = vld.sshfl [vmem:[#allocation1 + $0x8] sm:$0xff pattern:$0x75316420] }
  0x28   : > { %752 = vrot.lane.b32.xlu1 %v750_v9, %s2327_s17  ;;  %823 = vst [vmem:[#allocation1] ss:$2 sm:$0xff] %v536_v0  ;;  %754 = vrot.lane.b32.xlu2 %v751_v10, %s2327_s17  ;;  %v544_v39 = vsub.f32 1.0, %v543_v35 }
  0x2a   : > { %v545_v41 = vmul.f32 %v2296_v34, %v544_v39 }
  0x2c   : > { %v546_v44 = vadd.f32 %v2296_v34, %v545_v41  ;;  %v2333_v41 = vmov 0  }
  0x2d   : > { %2290 = vset.pattern.permute.xlu1 %v2333_v41  ;;  %2291 = vset.pattern.permute.xlu2 %v2333_v41 }
  0x2e   : > { %v550_v47 = vsel %vm549_vm4, %v2296_v34, %v546_v44  ;;  %2292 = vset.pattern.permute.xlu0 %v2333_v41 }
  0x2f   : > { %v825_v13 = vld.sshfl [vmem:[#allocation1 + $0x8] sm:$0xff pattern:$0x75316420]  ;;  %v824_v14 = vld.sshfl [vmem:[#allocation1] sm:$0xff pattern:$0x75316420]  ;;  %v555_v50 = vsel %vm552_vm5, %v554_v43, %v550_v47 }
  0x30   : > { %828 = vrot.lane.b32.xlu1 %v825_v13, %s2842_s18  ;;  %826 = vrot.lane.b32.xlu0 %v824_v14, %s2842_s18  ;;  %909 = vst [vmem:[#allocation1] ss:$2 sm:$0xff] %v905_v12  ;;  %v557_v52 = vmul.f32 %v555_v50, %v537_v25  ;;  %v2194_v13 = vld [vmem:[%s2822_s3 + $0x10] sm:$0xff]  ;;  %v2539_v14 = vld [vmem:[%s2821_s2 + $0x6] sm:$0x3] }
  0x31   : > { %611 = vrot.lane.b32.xlu2 %v608_v2, %s2325_s28  ;;  %v2518_v2 = vld [vmem:[%s2821_s2 + $0x4] sm:$0x3]  ;;  %v2619_v50 = vld [vmem:[%s2821_s2 + $0x10] sm:$0x3] }
  0x32   : > { %2182 = vmatmul.msk.f32.vlgmr.msra.gmra.mxu0 %vm563_vm7, %v557_v52  ;;  %v764_v4 = vperm.slane %v2518_v2, 0  ;;  %v765_v5 = vperm.slane %v2518_v2, 1  ;;  %v1199_v52 = vperm.slane %v2619_v50, 1 }
  0x37   : > { %v2453_v15 = vld.sshfl [vmem:[#allocation1] sm:$0xff pattern:$0x75316420]  ;;  %v2455_v16 = vld.sshfl [vmem:[#allocation1 + $0x8] sm:$0xff pattern:$0x75316420] }
  0x38   : > { %961 = vst [vmem:[#allocation1] ss:$2 sm:$0xff] %v536_v0 }
  0x3f   : > { %v962_v17 = vld.sshfl [vmem:[#allocation1] sm:$0xff pattern:$0x75316420]  ;;  %v963_v18 = vld.sshfl [vmem:[#allocation1 + $0x8] sm:$0xff pattern:$0x75316420] }
  0x40   : > { %964 = vrot.lane.b32.xlu1 %v962_v17, %s2329_s19  ;;  %1035 = vst [vmem:[#allocation1] ss:$2 sm:$0xff] %v536_v0  ;;  %v838_v17 = vperm.slane %v2539_v14, 0 }
  0x47   : > { %v1037_v19 = vld.sshfl [vmem:[#allocation1 + $0x8] sm:$0xff pattern:$0x75316420]  ;;  %v1036_v20 = vld.sshfl [vmem:[#allocation1] sm:$0xff pattern:$0x75316420] }
  0x48   : > { %1040 = vrot.lane.b32.xlu0 %v1037_v19, %s2836_s20  ;;  %1038 = vrot.lane.b32.xlu2 %v1036_v20, %s2836_s20  ;;  %1109 = vst [vmem:[#allocation1] ss:$2 sm:$0xff] %v536_v0  ;;  %s2850_s20 = smov 111  }
  0x4f   : > { %v1110_v21 = vld.sshfl [vmem:[#allocation1] sm:$0xff pattern:$0x75316420]  ;;  %v1111_v22 = vld.sshfl [vmem:[#allocation1 + $0x8] sm:$0xff pattern:$0x75316420] }
  0x50   : > { %1183 = vst [vmem:[#allocation1] ss:$2 sm:$0xff] %v536_v0  ;;  %966 = vrot.lane.b32.xlu2 %v963_v18, %s2329_s19  ;;  %v839_v18 = vperm.slane %v2539_v14, 1 }
  0x57   : > { %v1185_v23 = vld.sshfl [vmem:[#allocation1 + $0x8] sm:$0xff pattern:$0x75316420]  ;;  %v1184_v24 = vld.sshfl [vmem:[#allocation1] sm:$0xff pattern:$0x75316420] }
  0x58   : > { %1188 = vrot.lane.b32.xlu1 %v1185_v23, %s2838_s23  ;;  %1186 = vrot.lane.b32.xlu0 %v1184_v24, %s2838_s23  ;;  %2055 = vst [vmem:[#allocation1] ss:$2 sm:$0xff] %v536_v0  ;;  %v2184_v0 = vld [vmem:[%s2822_s3 + $0x8] sm:$0xff] }
  0x59   : > { %1112 = vrot.lane.b32.xlu2 %v1110_v21, %s2840_s24 }
  0x60   : > { %1114 = vrot.lane.b32.xlu0 %v1111_v22, %s2840_s24  ;;  %1259 = vperm.xlu1 %2290, %v604_v37   ;;  %s2851_s24 = smov 113  }
  0x82   : > { %v755_v36 = vpop.permute.xlu2 %754 }
  0x8a   : > { %v610_v45 = vpop.permute.xlu0 %609 }
  0x8b   : > { %v617_v46 = vsel %vm613_vm3, 0.0, %v610_v45  ;;  %v612_v53 = vpop.permute.xlu2 %611 }
  0x8c   : > { %v624_v48 = vmul.f32 %v620_v42, %v617_v46  ;;  %v614_v57 = vsel %vm613_vm3, %v610_v45, %v612_v53  ;;  %v1198_v53 = vperm.slane %v2619_v50, 0 }
  0x8d   : > { %v625_v63 = vmul.f32 %v621_v55, %v614_v57 }
  0x8e   : > { %2189 = vmatpush.msk.msra.mxu3 %vm2845_vm0, %v624_v48  ;;  %v2218_v48 = vld [vmem:[%s2822_s3 + $0x30] sm:$0xff] }
  0x8f   : > { %2190 = vmatmul.msk.f32.vlgmr.msra.gmra.mxu3 %vm2844_vm6, %v626_v49 }
  0x92   : > { %v633_v58 = vpop.permute.xlu1 %632  ;;  %v631_v59 = vpop.permute.xlu0 %630 }
  0x93   : > { %v634_v60 = vsel %vm594_vm8, %v631_v59, %v633_v58  ;;  %v637_v61 = vsel %vm594_vm8, 0.0, %v631_v59 }
  0x94   : > { %v646_v62 = vmul.f32 %v642_v54, %v634_v60  ;;  %v645_v1 = vmul.f32 %v641_v56, %v637_v61 }
  0x96   : > { %2187 = vmatpush.msk.msra.mxu2 %vm2845_vm0, %v646_v62  ;;  %2185 = vmatpush.msk.msra.mxu1 %vm2845_vm0, %v645_v1 }
  0x97   : > { %2188 = vmatmul.msk.f32.vlgmr.msra.gmra.mxu2 %vm2844_vm6, %v2184_v0  ;;  %2186 = vmatmul.msk.f32.vlgmr.msra.gmra.mxu1 %vm2844_vm6, %v2184_v0  ;;  %v2635_v0 = vld [vmem:[%s2821_s2 + $0xe] sm:$0x3] }
  0x98   : > { %2191 = vmatpush.msk.msrb.mxu1 %vm2845_vm0, %v625_v63  ;;  %v2230_v63 = vld [vmem:[%s2822_s3 + $0x40] sm:$0xff] }
  0x9a   : > { %v753_v8 = vpop.permute.xlu1 %752 }
  0x9b   : > { %v757_v9 = vsel %vm756_vm9, %v753_v8, %v755_v36  ;;  %v760_v10 = vsel %vm756_vm9, 0.0, %v753_v8  ;;  %v2591_v36 = vld [vmem:[%s2821_s2 + $0xc] sm:$0x3]  ;;  %v1124_v8 = vperm.slane %v2635_v0, 0 }
  0x9c   : > { %v768_v11 = vmul.f32 %v764_v4, %v760_v10  ;;  %v769_v12 = vmul.f32 %v765_v5, %v757_v9  ;;  %v1050_v39 = vperm.slane %v2591_v36, 0  ;;  %v1051_v40 = vperm.slane %v2591_v36, 1 }
  0x9d   : > { %v1125_v9 = vperm.slane %v2635_v0, 1 }
  0x9e   : > { %2195 = vmatpush.msk.msrb.mxu2 %vm2845_vm0, %v768_v11  ;;  %2197 = vmatpush.msk.msrb.mxu3 %vm2845_vm0, %v769_v12 }
  0x9f   : > { %2196 = vmatmul.msk.f32.vlgmr.msrb.gmra.mxu2 %vm2844_vm6, %v2194_v13  ;;  %2198 = vmatmul.msk.f32.vlgmr.msrb.gmra.mxu3 %vm2844_vm6, %v2194_v13 }
  0xa0   : > { %2192 = vmatmul.msk.f32.vlgmr.msrb.gmra.mxu1 %vm2844_vm6, %v626_v49  ;;  %2207 = vmatpush.msk.msra.mxu2 %vm2845_vm0, %v2453_v15  ;;  %v2200_v15 = vld [vmem:[%s2822_s3 + $0x18] sm:$0xff]  ;;  %v1264_v49 = vld [vmem:[%s2824_s5] sm:$0xff] }
  0xa1   : > { %2209 = vmatpush.msk.msra.mxu3 %vm2845_vm0, %v2455_v16  ;;  %v2206_v16 = vld [vmem:[%s2822_s3 + $0x20] sm:$0xff]  ;;  %1348 = vperm.xlu1 %2290, %v1264_v49  }
  0xa2   : > { %v829_v19 = vpop.permute.xlu1 %828  ;;  %v827_v20 = vpop.permute.xlu0 %826 }
  0xa3   : > { %v831_v21 = vsel %vm830_vm10, %v827_v20, %v829_v19  ;;  %v834_v22 = vsel %vm830_vm10, 0.0, %v827_v20  ;;  %v1039_v23 = vpop.permute.xlu2 %1038  ;;  %v2224_v20 = vld [vmem:[%s2822_s3 + $0x38] sm:$0xff] }
  0xa4   : > { %v842_v24 = vmul.f32 %v838_v17, %v834_v22  ;;  %v843_v25 = vmul.f32 %v839_v18, %v831_v21  ;;  %v562_v21 = vld [vmem:[%s2827_s8] sm:$0x1] }
  0xa6   : > { %2201 = vmatpush.msk.msrb.mxu0 %vm2845_vm0, %v842_v24  ;;  %2203 = vmatpush.msk.msra.mxu1 %vm2845_vm0, %v843_v25  ;;  %v587_v24 = vlaneseq }
  0xa7   : > { %2202 = vmatmul.msk.f32.vlgmr.msrb.gmra.mxu0 %vm2844_vm6, %v2200_v15  ;;  %2208 = vmatmul.msk.f32.vlgmr.msra.gmra.mxu2 %vm2844_vm6, %v2206_v16 }
  0xa8   : > { %2210 = vmatmul.msk.f32.vlgmr.msra.gmra.mxu3 %vm2844_vm6, %v2206_v16  ;;  %2204 = vmatmul.msk.f32.vlgmr.msra.gmra.mxu1 %vm2844_vm6, %v2200_v15  ;;  %v588_v15 = vshrl.u32 %v587_v24, 7  ;;  %v590_v16 = vand.u32 127, %v587_v24 }
  0xaa   : > { %vm591_vm15 = vcmp.eq.s32.totalorder %v590_v16, %v588_v15 }
  0xab   : > { %v967_v28 = vpop.permute.xlu2 %966 }
  0xac   : > { %v972_v29 = vsel %vm2846_vm11, %v967_v28, 0.0 }
  0xad   : > { %v981_v30 = vmul.f32 %v977_v27, %v972_v29 }
  0xaf   : > { %2215 = vmatpush.msk.msrb.mxu1 %vm2845_vm0, %v981_v30  ;;  %v584_v22 = vpop.f32.mrf.mxu0 }
  0xb0   : > { %2216 = vmatmul.msk.f32.vlgmr.msrb.gmra.mxu1 %vm2844_vm6, %v2212_v31 }
  0xb2   : > { %v965_v33 = vpop.permute.xlu1 %964 }
  0xb3   : > { %v969_v34 = vsel %vm2846_vm11, %v965_v33, %v967_v28  ;;  %v1113_v1 = vpop.permute.xlu2 %1112 }
  0xb4   : > { %v980_v35 = vmul.f32 %v976_v32, %v969_v34 }
  0xb6   : > { %2213 = vmatpush.msk.msra.mxu0 %vm2845_vm0, %v980_v35 }
  0xb7   : > { %2214 = vmatmul.msk.f32.vlgmr.msra.gmra.mxu0 %vm2844_vm6, %v2212_v31 }
  0xba   : > { %v1041_v43 = vpop.permute.xlu0 %1040 }
  0xbb   : > { %v1043_v44 = vsel %vm1042_vm12, %v1039_v23, %v1041_v43  ;;  %v1046_v45 = vsel %vm1042_vm12, %v1041_v43, 0.0  ;;  %v585_v23 = vadd.f32 %v584_v22, %v562_v21 }
  0xbc   : > { %v1054_v46 = vmul.f32 %v1050_v39, %v1043_v44  ;;  %v1055_v47 = vmul.f32 %v1051_v40, %v1046_v45 }
  0xbd   : > { %v592_v25 = vperm.slane %v585_v23, 0 }
  0xbe   : > { %2219 = vmatpush.msk.msrb.mxu2 %vm2845_vm0, %v1054_v46  ;;  %2221 = vmatpush.msk.msrb.mxu3 %vm2845_vm0, %v1055_v47 }
  0xbf   : > { %2220 = vmatmul.msk.f32.vlgmr.msrb.gmra.mxu2 %vm2844_vm6, %v2218_v48  ;;  %2222 = vmatmul.msk.f32.vlgmr.msrb.gmra.mxu3 %vm2844_vm6, %v2218_v48  ;;  %v2659_v28 = vsel %vm591_vm15, %v592_v25, 0.0 }
  0xca   : > { %v1189_v57 = vpop.permute.xlu1 %1188  ;;  %v1187_v58 = vpop.permute.xlu0 %1186 }
  0xcb   : > { %v1194_v59 = vsel %vm1190_vm13, %v1189_v57, 0.0  ;;  %v1191_v60 = vsel %vm1190_vm13, %v1187_v58, %v1189_v57 }
  0xcc   : > { %v1203_v61 = vmul.f32 %v1199_v52, %v1194_v59  ;;  %v1202_v62 = vmul.f32 %v1198_v53, %v1191_v60 }
  0xce   : > { %2231 = vmatpush.msk.msra.mxu2 %vm2845_vm0, %v1202_v62  ;;  %2233 = vmatpush.msk.msra.mxu3 %vm2845_vm0, %v1203_v61 }
  0xcf   : > { %2232 = vmatmul.msk.f32.vlgmr.msra.gmra.mxu2 %vm2844_vm6, %v2230_v63  ;;  %2234 = vmatmul.msk.f32.vlgmr.msra.gmra.mxu3 %vm2844_vm6, %v2230_v63 }
  0xd2   : > { %v1115_v10 = vpop.permute.xlu0 %1114 }
  0xd3   : > { %v1117_v11 = vsel %vm1116_vm14, %v1113_v1, %v1115_v10  ;;  %v1120_v12 = vsel %vm1116_vm14, %v1115_v10, 0.0 }
  0xd4   : > { %v1128_v13 = vmul.f32 %v1124_v8, %v1117_v11  ;;  %v1129_v19 = vmul.f32 %v1125_v9, %v1120_v12 }
  0xd6   : > { %2225 = vmatpush.msk.msrb.mxu0 %vm2845_vm0, %v1128_v13  ;;  %2227 = vmatpush.msk.msra.mxu1 %vm2845_vm0, %v1129_v19 }
  0xd7   : > { %2226 = vmatmul.msk.f32.vlgmr.msrb.gmra.mxu0 %vm2844_vm6, %v2224_v20  ;;  %2228 = vmatmul.msk.f32.vlgmr.msra.gmra.mxu1 %vm2844_vm6, %v2224_v20 }
 0x112   : > { %v726_v30 = vpop.f32.mrf.mxu3 }
 0x114   : > { %v677_v31 = vpop.f32.mrf.mxu1 }
 0x115   : > { %v727_v37 = vadd.f32 %v726_v30, %v677_v31  ;;  %v1260_v30 = vpop.permute.xlu1 %1259 }
 0x11a   : > { %v697_v29 = vpop.f32.mrf.mxu2 }
 0x11d   : > { %v746_v35 = vpop.f32.mrf.mxu1 }
 0x11e   : > { %v747_v41 = vadd.f32 %v746_v35, %v697_v29 }
 0x122   : > { %v798_v33 = vpop.f32.mrf.mxu2  ;;  %v818_v34 = vpop.f32.mrf.mxu3 }
 0x123   : > { %v821_v47 = vadd.f32 %v798_v33, %v727_v37  ;;  %v822_v48 = vadd.f32 %v818_v34, %v747_v41  ;;  %v598_v41 = vadd.s32 8, %v588_v15 }
 0x124   : > { %v872_v45 = vpop.f32.mrf.mxu0 }
 0x125   : > { %v892_v46 = vpop.f32.mrf.mxu1  ;;  %v895_v49 = vadd.f32 %v872_v45, %v821_v47  ;;  %vm599_vm1 = vcmp.eq.s32.totalorder %v590_v16, %v598_v41 }
 0x126   : > { %v896_v57 = vadd.f32 %v892_v46, %v822_v48  ;;  %v2665_v46 = vld [vmem:[%s2834_s15] sm:$0xff] }
 0x12a   : > { %v936_v43 = vpop.f32.mrf.mxu2 }
 0x12b   : > { %v956_v44 = vpop.f32.mrf.mxu3  ;;  %v959_v62 = vadd.f32 %v936_v43, %v895_v49 }
 0x12c   : > { %v960_v63 = vadd.f32 %v956_v44, %v896_v57  ;;  %v600_v44 = vsel %vm599_vm1, %v592_v25, 0.0  ;;  %v1265_v25 = vld [vmem:[%s2825_s6] sm:$0xff] }
 0x12d   : > { %v1030_v61 = vpop.f32.mrf.mxu1  ;;  %v601_v45 = vsel %vm594_vm8, %v600_v44, 0.0 }
 0x12e   : > { %v1034_v10 = vadd.f32 %v1030_v61, %v960_v63 }
 0x134   : > { %v1010_v60 = vpop.f32.mrf.mxu0 }
 0x135   : > { %v1033_v1 = vadd.f32 %v1010_v60, %v959_v62 }
 0x142   : > { %v1084_v58 = vpop.f32.mrf.mxu2  ;;  %v1104_v59 = vpop.f32.mrf.mxu3 }
 0x143   : > { %v1107_v11 = vadd.f32 %v1084_v58, %v1033_v1  ;;  %v1108_v12 = vadd.f32 %v1104_v59, %v1034_v10 }
 0x152   : > { %v1232_v13 = vpop.f32.mrf.mxu2  ;;  %v1252_v19 = vpop.f32.mrf.mxu3 }
 0x154   : > { %v1158_v20 = vpop.f32.mrf.mxu0  ;;  %v1178_v21 = vpop.f32.mrf.mxu1 }
 0x155   : > { %v1181_v22 = vadd.f32 %v1158_v20, %v1107_v11  ;;  %v1182_v23 = vadd.f32 %v1178_v21, %v1108_v12  ;;  %v595_v11 = vsel %vm594_vm8, %v2659_v28, 0.0  ;;  %v1349_v12 = vpop.permute.xlu1 %1348 }
 0x157   : > { %v1255_v24 = vadd.f32 %v1232_v13, %v1181_v22  ;;  %v1256_v29 = vadd.f32 %v1252_v19, %v1182_v23 }
 0x159   : > { %v1262_v31 = vadd.f32 %v1260_v30, %v1255_v24  ;;  %v1263_v33 = vadd.f32 %v1260_v30, %v1256_v29 }
 0x15b   : > { %v1266_v34 = vadd.f32 %v1263_v33, %v1262_v31  ;;  %v1269_v35 = vmul.f32 %v1262_v31, %v1262_v31  ;;  %v1270_v37 = vmul.f32 %v1263_v33, %v1263_v33 }
 0x15d   : > { %1267 = vadd.xlane.f32.xlu2 %v1266_v34  ;;  %v1271_v43 = vadd.f32 %v1270_v37, %v1269_v35 }
 0x15f   : > { %1272 = vadd.xlane.f32.xlu0 %v1271_v43 }
 0x167   : > { %602 = vadd.xlane.f32.xlu0 %v601_v45 }
 0x175   : > { %1355 = vperm.xlu2 %2291, %v1265_v25  }
 0x1d0   : > { %v1268_v47 = vpop.xlane.xlu2 %1267 }
 0x1d1   : > { %1294 = vmatpush.msra.mxu0 %v1268_v47 }
 0x1d2   : > { %v1273_v48 = vpop.xlane.xlu0 %1272  ;;  %2235 = vmatmul.msk.f32.vlgmr.msra.gmra.mxu0 %vm1275_vm2, %v2665_v46 }
 0x1d3   : > { %1314 = vmatpush.msrb.mxu1 %v1273_v48 }
 0x1d4   : > { %2236 = vmatmul.msk.f32.vlgmr.msrb.gmra.mxu1 %vm1275_vm2, %v2665_v46 }
 0x1d8   : > { %v1356_v30 = vpop.permute.xlu2 %1355 }
 0x1da   : > { %v603_v45 = vpop.xlane.xlu0 %602 }
 0x24f   : > { %v1296_v15 = vpop.f32.mrf.mxu0 }
 0x250   : > { %v1319_v16 = vmul.f32 %v1296_v15, %v1296_v15  ;;  %1334 = vperm.xlu1 %2290, %v1296_v15  }
 0x251   : > { %v1316_v49 = vpop.f32.mrf.mxu1 }
 0x252   : > { %v1320_v57 = vsub.f32 %v1316_v49, %v1319_v16 }
 0x254   : > { %v1321_v58 = vadd.f32 1e-05, %v1320_v57 }
 0x256   : > { %2297 = vrsqrt.f32 %v1321_v58  ;;  %vm1328_vm5 = vweird.f32 %v1321_v58 }
 0x25c   : > { %v2298_v59 = vpop.eup %2297 }
 0x25d   : > { %v1323_v60 = vmul.f32 %v2298_v59, %v1321_v58  ;;  %vm1329_vm4 = vweird.f32 %v2298_v59 }
 0x25e   : > { %vm1330_vm7 = vmor %vm1328_vm5, %vm1329_vm4 }
 0x25f   : > { %v1324_v61 = vmul.f32 %v2298_v59, %v1323_v60 }
 0x261   : > { %v1325_v62 = vmul.f32 0.5, %v1324_v61 }
 0x263   : > { %v1326_v63 = vsub.f32 1.5, %v1325_v62 }
 0x265   : > { %v1327_v1 = vmul.f32 %v2298_v59, %v1326_v63 }
 0x267   : > { %v1331_v10 = vsel %vm1330_vm7, %v2298_v59, %v1327_v1 }
 0x268   : > { %1341 = vperm.xlu1 %2290, %v1331_v10  }
 0x292   : > { %596 = vadd.xlane.f32.xlu1 %v595_v11 }
 0x2c2   : > { %v1335_v13 = vpop.permute.xlu1 %1334 }
 0x2c3   : > { %v1337_v20 = vsub.f32 %v1262_v31, %v1335_v13  ;;  %v1338_v21 = vsub.f32 %v1263_v33, %v1335_v13 }
 0x2da   : > { %v1342_v19 = vpop.permute.xlu1 %1341 }
 0x2db   : > { %v1344_v22 = vmul.f32 %v1342_v19, %v1337_v20  ;;  %v1345_v23 = vmul.f32 %v1342_v19, %v1338_v21 }
 0x2dd   : > { %v1351_v24 = vmul.f32 %v1349_v12, %v1344_v22  ;;  %v1352_v29 = vmul.f32 %v1349_v12, %v1345_v23 }
 0x2df   : > { %v1358_v35 = vadd.f32 %v1356_v30, %v1351_v24  ;;  %v1359_v37 = vadd.f32 %v1356_v30, %v1352_v29 }
 0x305   : > { %v597_v34 = vpop.xlane.xlu1 %596 }
 0x306   : > { %v1360_v41 = vadd.f32 1.0, %v597_v34 }
 0x308   : > { %v1361_v43 = vmul.f32 %v1360_v41, %v1358_v35  ;;  %v1362_v44 = vmul.f32 %v1360_v41, %v1359_v37  ;;  %v1405_v41 = vld [vmem:[%s2829_s10] sm:$0xff] }
 0x30a   : > { %v1363_v47 = vadd.f32 %v1361_v43, %v603_v45  ;;  %v1364_v28 = vadd.f32 %v1362_v44, %v603_v45  ;;  %v1917_v43 = vld [vmem:[%s2830_s11] sm:$0xff] }
 0x30c   : > { %v1365_v48 = vsub.f32 0.0, %v1363_v47  ;;  %v1366_v25 = vsub.f32 0.0, %v1364_v28 }
 0x30e   : > { %v1367_v15 = vmul.f32 1.442695, %v1365_v48  ;;  %v1369_v16 = vmul.f32 1.442695, %v1366_v25 }
 0x310   : > { %2299 = vpow2.f32 %v1367_v15 }
 0x311   : > { %2301 = vpow2.f32 %v1369_v16 }
 0x316   : > { %v2300_v31 = vpop.eup %2299 }
 0x317   : > { %v2302_v33 = vpop.eup %2301  ;;  %v1371_v49 = vadd.f32 1.0, %v2300_v31 }
 0x318   : > { %v1372_v57 = vadd.f32 1.0, %v2302_v33 }
 0x319   : > { %2303 = vrcp.f32 %v1371_v49  ;;  %v1384_v63 = vand.u32 2147483648, %v1371_v49  ;;  %v1382_v11 = vand.u32 2147483647, %v1371_v49  ;;  %vm1378_vm4 = vweird.f32 %v1371_v49 }
 0x31a   : > { %2305 = vrcp.f32 %v1372_v57  ;;  %v1399_v12 = vand.u32 2147483648, %v1372_v57  ;;  %v1397_v19 = vand.u32 2147483647, %v1372_v57  ;;  %vm1393_vm7 = vweird.f32 %v1372_v57 }
 0x31b   : > { %v1385_v21 = vor.u32 1.1754944e-38, %v1384_v63  ;;  %vm1383_vm6 = vcmp.eq.f32.partialorder %v1382_v11, 8.507059e+37 }
 0x31c   : > { %v1400_v24 = vor.u32 1.1754944e-38, %v1399_v12  ;;  %vm1398_vm11 = vcmp.eq.f32.partialorder %v1397_v19, 8.507059e+37 }
 0x31f   : > { %v2304_v58 = vpop.eup %2303 }
 0x320   : > { %v2306_v59 = vpop.eup %2305  ;;  %v1374_v60 = vmul.f32 %v2304_v58, %v1371_v49  ;;  %vm1379_vm15 = vweird.f32 %v2304_v58 }
 0x321   : > { %v1389_v61 = vmul.f32 %v2306_v59, %v1372_v57  ;;  %vm1394_vm1 = vweird.f32 %v2306_v59  ;;  %vm1380_vm5 = vmor %vm1378_vm4, %vm1379_vm15 }
 0x322   : > { %v1375_v62 = vsub.f32 1.0, %v1374_v60  ;;  %vm1395_vm0 = vmor %vm1393_vm7, %vm1394_vm1 }
 0x323   : > { %v1390_v1 = vsub.f32 1.0, %v1389_v61 }
 0x324   : > { %v1376_v10 = vmul.f32 %v2304_v58, %v1375_v62 }
 0x325   : > { %v1391_v13 = vmul.f32 %v2306_v59, %v1390_v1  ;;  %v2242_v1 = vld [vmem:[%s2828_s9 + $0x10] sm:$0xff] }
 0x326   : > { %v1377_v20 = vadd.f32 %v2304_v58, %v1376_v10 }
 0x327   : > { %v1392_v22 = vadd.f32 %v2306_v59, %v1391_v13  ;;  %v2245_v13 = vld [vmem:[%s2828_s9 + $0x18] sm:$0xff] }
 0x328   : > { %v1381_v23 = vsel %vm1380_vm5, %v2304_v58, %v1377_v20  ;;  %v2237_v58 = vld [vmem:[%s2828_s9 + $0x8] sm:$0xff]  ;;  %v2248_v20 = vld [vmem:[%s2828_s9 + $0x20] sm:$0xff] }
 0x329   : > { %v1386_v29 = vsel %vm1383_vm6, %v1385_v21, %v1381_v23  ;;  %v1396_v30 = vsel %vm1395_vm0, %v2306_v59, %v1392_v22  ;;  %v2254_v23 = vld [vmem:[%s2828_s9 + $0x30] sm:$0xff]  ;;  %vm2853_vm0 = vcmask 1039360   ;;  %vm2855_vm6 = vcmask 1043456  }
 0x32a   : > { %v1401_v34 = vsel %vm1398_vm11, %v1400_v24, %v1396_v30  ;;  %v1403_v35 = vmul.f32 %v1386_v29, %v1363_v47 }
 0x32b   : > { %v1404_v37 = vmul.f32 %v1401_v34, %v1364_v28  ;;  %v2251_v34 = vld [vmem:[%s2828_s9 + $0x28] sm:$0xff] }
 0x32c   : > { %1419 = vrot.lane.b32.xlu0 %v1403_v35, %s2326_s0  ;;  %v1633_v51 = vmul.f32 %v1403_v35, %v900_v7 }
 0x32d   : > { %1519 = vrot.lane.b32.xlu1 %v1404_v37, %s2327_s17  ;;  %1421 = vrot.lane.b32.xlu2 %v1404_v37, %s2326_s0 }
 0x334   : > { %1408 = vrot.lane.b32.xlu0 %v1403_v35, %s2325_s28 }
 0x335   : > { %1682 = vrot.lane.b32.xlu1 %v1403_v35, %s2329_s19  ;;  %1517 = vrot.lane.b32.xlu2 %v1403_v35, %s2327_s17  ;;  %s2852_s17 = smov 112  }
 0x33c   : > { %1574 = vrot.lane.b32.xlu0 %v1403_v35, %s2849_s26 }
 0x33d   : > { %1855 = vrot.lane.b32.xlu1 %v1404_v37, %s2850_s20  ;;  %1410 = vrot.lane.b32.xlu2 %v1404_v37, %s2325_s28 }
 0x344   : > { %1739 = vrot.lane.b32.xlu0 %v1403_v35, %s2851_s24 }
 0x345   : > { %1912 = vperm.xlu1 %2290, %v1405_v41   ;;  %1576 = vrot.lane.b32.xlu2 %v1404_v37, %s2849_s26 }
 0x34c   : > { %1684 = vrot.lane.b32.xlu0 %v1404_v37, %s2329_s19  ;;  %s535_s19 = scalar_lea.vmem %s2835_s16, %s2272_s27 }
 0x34d   : > { %1996 = vperm.xlu1 %2290, %v1917_v43   ;;  %1741 = vrot.lane.b32.xlu2 %v1404_v37, %s2851_s24 }
 0x354   : > { %1796 = vrot.lane.b32.xlu0 %v1403_v35, %s2852_s17 }
 0x355   : > { %1853 = vrot.lane.b32.xlu2 %v1403_v35, %s2850_s20  ;;  %v2260_v35 = vld [vmem:[%s2828_s9 + $0x40] sm:$0xff] }
 0x35d   : > { %1798 = vrot.lane.b32.xlu2 %v1404_v37, %s2852_s17 }
 0x387   : > { %v1422_v44 = vpop.permute.xlu2 %1421 }
 0x38f   : > { %v1518_v45 = vpop.permute.xlu2 %1517 }
 0x390   : > { %v1524_v48 = vsel %vm756_vm9, 0.0, %v1518_v45 }
 0x391   : > { %v1525_v60 = vmul.f32 %v1524_v48, %v764_v4 }
 0x397   : > { %v1411_v47 = vpop.permute.xlu2 %1410 }
 0x39e   : > { %v1420_v28 = vpop.permute.xlu0 %1419 }
 0x39f   : > { %v1520_v25 = vpop.permute.xlu1 %1519  ;;  %v1577_v15 = vpop.permute.xlu2 %1576  ;;  %v1423_v16 = vsel %vm594_vm8, %v1420_v28, %v1422_v44  ;;  %v1426_v31 = vsel %vm594_vm8, 0.0, %v1420_v28  ;;  %vm2856_vm8 = vmmov %vm2855_vm6 }
 0x3a0   : > { %v1521_v33 = vsel %vm756_vm9, %v1518_v45, %v1520_v25  ;;  %v1427_v49 = vmul.f32 %v1426_v31, %v641_v56  ;;  %v1428_v57 = vmul.f32 %v1423_v16, %v642_v54  ;;  %v1634_v54 = vmul.f32 %v1404_v37, %v901_v6  ;;  %v1418_v6 = vld [vmem:[%s2828_s9] sm:$0xff] }
 0x3a1   : > { %v1526_v59 = vmul.f32 %v1521_v33, %v765_v5  ;;  %vm2857_vm9 = vcmask 31744  }
 0x3a2   : > { %1449 = vmatpush.msrb.mxu2 %v1427_v49  ;;  %1469 = vmatpush.msrb.mxu3 %v1428_v57 }
 0x3a3   : > { %2238 = vmatmul.msk.f32.vlgmr.msrb.gmra.mxu2 %vm1275_vm2, %v2237_v58  ;;  %2239 = vmatmul.msk.f32.vlgmr.msrb.gmra.mxu3 %vm1275_vm2, %v2237_v58 }
 0x3a4   : > { %1547 = vmatpush.msra.mxu2 %v1525_v60  ;;  %1567 = vmatpush.msra.mxu3 %v1526_v59 }
 0x3a6   : > { %1655 = vmatpush.msrb.mxu2 %v1633_v51  ;;  %1675 = vmatpush.msrb.mxu3 %v1634_v54  ;;  %v1409_v56 = vpop.permute.xlu0 %1408 }
 0x3a7   : > { %v1683_v5 = vpop.permute.xlu1 %1682  ;;  %v1742_v2 = vpop.permute.xlu2 %1741  ;;  %v1412_v4 = vsel %vm613_vm3, %v1409_v56, %v1411_v47  ;;  %v1415_v61 = vsel %vm613_vm3, 0.0, %v1409_v56  ;;  %vm2854_vm3 = vmmov %vm2853_vm0 }
 0x3a8   : > { %v1746_v62 = vsel %vm1042_vm12, %v1742_v2, 0.0  ;;  %v1416_v63 = vmul.f32 %v1415_v61, %v620_v42  ;;  %v1417_v3 = vmul.f32 %v1412_v4, %v621_v55 }
 0x3a9   : > { %v1748_v7 = vmul.f32 %v1746_v62, %v1051_v40 }
 0x3aa   : > { %1492 = vmatpush.msrb.mxu0 %v1416_v63  ;;  %1512 = vmatpush.msra.mxu1 %v1417_v3 }
 0x3ab   : > { %2240 = vmatmul.msk.f32.vlgmr.msrb.gmra.mxu0 %vm1275_vm2, %v1418_v6  ;;  %2241 = vmatmul.msk.f32.vlgmr.msra.gmra.mxu1 %vm1275_vm2, %v1418_v6 }
 0x3ac   : > { %2243 = vmatmul.msk.f32.vlgmr.msra.gmra.mxu2 %vm1275_vm2, %v2242_v1  ;;  %2244 = vmatmul.msk.f32.vlgmr.msra.gmra.mxu3 %vm1275_vm2, %v2242_v1 }
 0x3ad   : > { %1789 = vmatpush.msra.mxu3 %v1748_v7 }
 0x3ae   : > { %v1575_v38 = vpop.permute.xlu0 %1574 }
 0x3af   : > { %v1856_v42 = vpop.permute.xlu1 %1855  ;;  %v1578_v55 = vsel %vm830_vm10, %v1575_v38, %v1577_v15  ;;  %v1581_v40 = vsel %vm830_vm10, 0.0, %v1575_v38  ;;  %v1854_v21 = vpop.permute.xlu2 %1853  ;;  %vm2858_vm10 = vmmov %vm2857_vm9 }
 0x3b0   : > { %v1860_v10 = vsel %vm1190_vm13, %v1856_v42, 0.0  ;;  %v1582_v11 = vmul.f32 %v1581_v40, %v838_v17  ;;  %v1583_v12 = vmul.f32 %v1578_v55, %v839_v18  ;;  %v1857_v14 = vsel %vm1190_vm13, %v1854_v21, %v1856_v42 }
 0x3b1   : > { %v1862_v19 = vmul.f32 %v1860_v10, %v1199_v52  ;;  %v1861_v22 = vmul.f32 %v1857_v14, %v1198_v53  ;;  %v2056_v14 = vld.sshfl [vmem:[#allocation1] sm:$0xff pattern:$0x75316420] }
 0x3b2   : > { %1604 = vmatpush.msra.mxu0 %v1582_v11  ;;  %1624 = vmatpush.msrb.mxu1 %v1583_v12 }
 0x3b3   : > { %2246 = vmatmul.msk.f32.vlgmr.msra.gmra.mxu0 %vm1275_vm2, %v2245_v13  ;;  %2247 = vmatmul.msk.f32.vlgmr.msrb.gmra.mxu1 %vm1275_vm2, %v2245_v13 }
 0x3b4   : > { %2249 = vmatmul.msk.f32.vlgmr.msrb.gmra.mxu2 %vm1275_vm2, %v2248_v20  ;;  %2250 = vmatmul.msk.f32.vlgmr.msrb.gmra.mxu3 %vm1275_vm2, %v2248_v20 }
 0x3b5   : > { %1903 = vmatpush.msrb.mxu3 %v1862_v19 }
 0x3b6   : > { %v1740_v17 = vpop.permute.xlu0 %1739 }
 0x3b7   : > { %v1743_v18 = vsel %vm1042_vm12, %v1740_v17, %v1742_v2  ;;  %v1799_v24 = vpop.permute.xlu2 %1798  ;;  %v1913_v55 = vpop.permute.xlu1 %1912  ;;  %v2057_v17 = vld.sshfl [vmem:[#allocation1 + $0x8] sm:$0xff pattern:$0x75316420] }
 0x3b8   : > { %v1747_v52 = vmul.f32 %v1743_v18, %v1050_v39  ;;  %v1803_v30 = vsel %vm1116_vm14, %v1799_v24, 0.0  ;;  %v2048_v18 = vld [vmem:[%s2832_s13] sm:$0xff] }
 0x3b9   : > { %v1805_v37 = vmul.f32 %v1803_v30, %v1125_v9  ;;  %v2257_v9 = vld [vmem:[%s2828_s9 + $0x38] sm:$0xff] }
 0x3ba   : > { %1769 = vmatpush.msra.mxu2 %v1747_v52 }
 0x3bc   : > { %1883 = vmatpush.msrb.mxu2 %v1861_v22  ;;  %2256 = vmatmul.msk.f32.vlgmr.msra.gmra.mxu3 %vm1275_vm2, %v2254_v23 }
 0x3bd   : > { %2255 = vmatmul.msk.f32.vlgmr.msra.gmra.mxu2 %vm1275_vm2, %v2254_v23  ;;  %2267 = vmatpush.msk.msra.mxu3 %vm2856_vm8, %v2057_v17 }
 0x3be   : > { %v1685_v29 = vpop.permute.xlu0 %1684  ;;  %2265 = vmatpush.msk.msra.mxu2 %vm2855_vm6, %v2056_v14 }
 0x3bf   : > { %v1686_v36 = vsel %vm2853_vm0, %v1683_v5, %v1685_v29  ;;  %v1689_v39 = vsel %vm2854_vm3, %v1685_v29, 0.0 }
 0x3c0   : > { %v1690_v50 = vmul.f32 %v1686_v36, %v976_v32  ;;  %v1691_v53 = vmul.f32 %v1689_v39, %v977_v27 }
 0x3c2   : > { %1712 = vmatpush.msrb.mxu0 %v1690_v50  ;;  %1732 = vmatpush.msra.mxu1 %v1691_v53 }
 0x3c3   : > { %2252 = vmatmul.msk.f32.vlgmr.msrb.gmra.mxu0 %vm1275_vm2, %v2251_v34  ;;  %2253 = vmatmul.msk.f32.vlgmr.msra.gmra.mxu1 %vm1275_vm2, %v2251_v34 }
 0x3c4   : > { %1846 = vmatpush.msrb.mxu1 %v1805_v37  ;;  %2262 = vmatmul.msk.f32.vlgmr.msrb.gmra.mxu3 %vm1275_vm2, %v2260_v35  ;;  %v2049_v37 = vld [vmem:[%s2833_s14] sm:$0xff] }
 0x3c5   : > { %2261 = vmatmul.msk.f32.vlgmr.msrb.gmra.mxu2 %vm1275_vm2, %v2260_v35  ;;  %v1918_v35 = vld [vmem:[%s2831_s12] sm:$0xff] }
 0x3c6   : > { %v1797_v26 = vpop.permute.xlu0 %1796 }
 0x3c7   : > { %v1800_v27 = vsel %vm1116_vm14, %v1797_v26, %v1799_v24  ;;  %v1997_v26 = vpop.permute.xlu1 %1996 }
 0x3c8   : > { %v1804_v32 = vmul.f32 %v1800_v27, %v1124_v8 }
 0x3ca   : > { %1826 = vmatpush.msra.mxu0 %v1804_v32 }
 0x3cb   : > { %2258 = vmatmul.msk.f32.vlgmr.msra.gmra.mxu0 %vm1275_vm2, %v2257_v9  ;;  %2259 = vmatmul.msk.f32.vlgmr.msrb.gmra.mxu1 %vm1275_vm2, %v2257_v9 }
 0x3cc   : > { %2268 = vmatmul.msk.f32.vlgmr.msra.gmra.mxu3 %vm2858_vm10, %v2048_v18 }
 0x3cd   : > { %2266 = vmatmul.msk.f32.vlgmr.msra.gmra.mxu2 %vm2857_vm9, %v2048_v18 }
 0x426   : > { %v1451_v41 = vpop.f32.mrf.mxu2  ;;  %v1471_v43 = vpop.f32.mrf.mxu3 }
 0x428   : > { %v1494_v44 = vpop.f32.mrf.mxu0  ;;  %v1514_v45 = vpop.f32.mrf.mxu1 }
 0x429   : > { %v1495_v8 = vadd.f32 %v1494_v44, %v1451_v41  ;;  %v1515_v16 = vadd.f32 %v1514_v45, %v1471_v43 }
 0x42f   : > { %v1549_v47 = vpop.f32.mrf.mxu2  ;;  %v1569_v28 = vpop.f32.mrf.mxu3 }
 0x430   : > { %v1606_v15 = vpop.f32.mrf.mxu0  ;;  %v1626_v0 = vpop.f32.mrf.mxu1  ;;  %v1572_v31 = vadd.f32 %v1549_v47, %v1495_v8  ;;  %v1573_v33 = vadd.f32 %v1569_v28, %v1515_v16 }
 0x432   : > { %v1629_v49 = vadd.f32 %v1606_v15, %v1572_v31  ;;  %v1630_v57 = vadd.f32 %v1626_v0, %v1573_v33 }
 0x437   : > { %v1657_v48 = vpop.f32.mrf.mxu2  ;;  %v1677_v25 = vpop.f32.mrf.mxu3 }
 0x438   : > { %v1680_v54 = vadd.f32 %v1657_v48, %v1629_v49  ;;  %v1681_v56 = vadd.f32 %v1677_v25, %v1630_v57 }
 0x43f   : > { %v1791_v59 = vpop.f32.mrf.mxu3 }
 0x440   : > { %v1771_v58 = vpop.f32.mrf.mxu2  ;;  %v1714_v60 = vpop.f32.mrf.mxu0 }
 0x441   : > { %v1734_v51 = vpop.f32.mrf.mxu1  ;;  %v1737_v5 = vadd.f32 %v1714_v60, %v1680_v54 }
 0x442   : > { %v1738_v2 = vadd.f32 %v1734_v51, %v1681_v56 }
 0x443   : > { %v1794_v4 = vadd.f32 %v1771_v58, %v1737_v5 }
 0x444   : > { %v1795_v61 = vadd.f32 %v1791_v59, %v1738_v2 }
 0x447   : > { %v1905_v1 = vpop.f32.mrf.mxu3 }
 0x448   : > { %v1885_v62 = vpop.f32.mrf.mxu2  ;;  %v1828_v63 = vpop.f32.mrf.mxu0 }
 0x449   : > { %v1848_v3 = vpop.f32.mrf.mxu1  ;;  %v1851_v6 = vadd.f32 %v1828_v63, %v1794_v4 }
 0x44a   : > { %v1852_v7 = vadd.f32 %v1848_v3, %v1795_v61 }
 0x44b   : > { %v1908_v38 = vadd.f32 %v1885_v62, %v1851_v6 }
 0x44c   : > { %v1909_v42 = vadd.f32 %v1905_v1, %v1852_v7 }
 0x44d   : > { %v1915_v40 = vadd.f32 %v1913_v55, %v1908_v38 }
 0x44e   : > { %v1916_v10 = vadd.f32 %v1913_v55, %v1909_v42 }
 0x44f   : > { %v1922_v12 = vmul.f32 %v1915_v40, %v1915_v40 }
 0x450   : > { %v1919_v11 = vadd.f32 %v1916_v10, %v1915_v40  ;;  %v1923_v13 = vmul.f32 %v1916_v10, %v1916_v10  ;;  %v2082_v1 = vpop.f32.mrf.mxu2 }
 0x452   : > { %1920 = vadd.xlane.f32.xlu0 %v1919_v11  ;;  %v1924_v19 = vadd.f32 %v1923_v13, %v1922_v12 }
 0x454   : > { %1925 = vadd.xlane.f32.xlu2 %v1924_v19 }
 0x4c5   : > { %v1921_v20 = vpop.xlane.xlu0 %1920 }
 0x4c6   : > { %1942 = vmatpush.msrb.mxu0 %v1921_v20 }
 0x4c7   : > { %v1926_v21 = vpop.xlane.xlu2 %1925  ;;  %2263 = vmatmul.msk.f32.vlgmr.msrb.gmra.mxu0 %vm1275_vm2, %v2665_v46 }
 0x4c8   : > { %1962 = vmatpush.msra.mxu1 %v1926_v21 }
 0x4c9   : > { %2264 = vmatmul.msk.f32.vlgmr.msra.gmra.mxu1 %vm1275_vm2, %v2665_v46 }
 0x544   : > { %v1944_v52 = vpop.f32.mrf.mxu0 }
 0x545   : > { %v1967_v22 = vmul.f32 %v1944_v52, %v1944_v52  ;;  %1982 = vperm.xlu1 %2290, %v1944_v52  }
 0x546   : > { %v1964_v23 = vpop.f32.mrf.mxu1 }
 0x547   : > { %v1968_v24 = vsub.f32 %v1964_v23, %v1967_v22 }
 0x549   : > { %v1969_v46 = vadd.f32 1e-05, %v1968_v24 }
 0x54b   : > { %2307 = vrsqrt.f32 %v1969_v46  ;;  %vm1976_vm12 = vweird.f32 %v1969_v46 }
 0x551   : > { %v2308_v29 = vpop.eup %2307 }
 0x552   : > { %v1971_v30 = vmul.f32 %v2308_v29, %v1969_v46  ;;  %vm1977_vm11 = vweird.f32 %v2308_v29 }
 0x553   : > { %vm1978_vm13 = vmor %vm1976_vm12, %vm1977_vm11 }
 0x554   : > { %v1972_v36 = vmul.f32 %v2308_v29, %v1971_v30 }
 0x556   : > { %v1973_v39 = vmul.f32 0.5, %v1972_v36 }
 0x558   : > { %v1974_v50 = vsub.f32 1.5, %v1973_v39 }
 0x55a   : > { %v1975_v53 = vmul.f32 %v2308_v29, %v1974_v50 }
 0x55c   : > { %v1979_v34 = vsel %vm1978_vm13, %v2308_v29, %v1975_v53 }
 0x55d   : > { %1989 = vperm.xlu1 %2290, %v1979_v34  }
 0x565   : > { %2003 = vperm.xlu1 %2290, %v1918_v35  }
 0x56d   : > { %2052 = vperm.xlu1 %2290, %v2049_v37  }
 0x5b7   : > { %v1983_v27 = vpop.permute.xlu1 %1982 }
 0x5b8   : > { %v1985_v9 = vsub.f32 %v1915_v40, %v1983_v27  ;;  %v1986_v41 = vsub.f32 %v1916_v10, %v1983_v27  ;;  %v2102_v40 = vpop.f32.mrf.mxu3 }
 0x5cf   : > { %v1990_v32 = vpop.permute.xlu1 %1989 }
 0x5d0   : > { %v1992_v43 = vmul.f32 %v1990_v32, %v1985_v9  ;;  %v1993_v44 = vmul.f32 %v1990_v32, %v1986_v41 }
 0x5d2   : > { %v1999_v45 = vmul.f32 %v1997_v26, %v1992_v43  ;;  %v2000_v47 = vmul.f32 %v1997_v26, %v1993_v44 }
 0x5d7   : > { %v2004_v28 = vpop.permute.xlu1 %2003 }
 0x5d8   : > { %v2006_v48 = vadd.f32 %v2004_v28, %v1999_v45  ;;  %v2007_v25 = vadd.f32 %v2004_v28, %v2000_v47 }
 0x5da   : > { %v2008_v15 = vsub.f32 0.0, %v2006_v48  ;;  %v2009_v0 = vsub.f32 0.0, %v2007_v25 }
 0x5dc   : > { %v2010_v8 = vmul.f32 1.442695, %v2008_v15  ;;  %v2012_v16 = vmul.f32 1.442695, %v2009_v0 }
 0x5de   : > { %2309 = vpow2.f32 %v2010_v8 }
 0x5df   : > { %2311 = vpow2.f32 %v2012_v16  ;;  %v2053_v38 = vpop.permute.xlu1 %2052 }
 0x5e0   : > { %v2083_v19 = vadd.f32 %v2082_v1, %v2053_v38  ;;  %v2103_v21 = vadd.f32 %v2102_v40, %v2053_v38 }
 0x5e4   : > { %v2310_v31 = vpop.eup %2309 }
 0x5e5   : > { %v2312_v33 = vpop.eup %2311  ;;  %v2014_v49 = vadd.f32 1.0, %v2310_v31 }
 0x5e6   : > { %v2015_v57 = vadd.f32 1.0, %v2312_v33 }
 0x5e7   : > { %2313 = vrcp.f32 %v2014_v49  ;;  %v2027_v56 = vand.u32 2147483648, %v2014_v49  ;;  %v2025_v4 = vand.u32 2147483647, %v2014_v49  ;;  %vm2021_vm15 = vweird.f32 %v2014_v49 }
 0x5e8   : > { %2315 = vrcp.f32 %v2015_v57  ;;  %v2042_v61 = vand.u32 2147483648, %v2015_v57  ;;  %v2040_v63 = vand.u32 2147483647, %v2015_v57  ;;  %vm2036_vm4 = vweird.f32 %v2015_v57 }
 0x5e9   : > { %v2028_v6 = vor.u32 1.1754944e-38, %v2027_v56  ;;  %vm2026_vm5 = vcmp.eq.f32.partialorder %v2025_v4, 8.507059e+37 }
 0x5ea   : > { %v2043_v55 = vor.u32 1.1754944e-38, %v2042_v61  ;;  %vm2041_vm0 = vcmp.eq.f32.partialorder %v2040_v63, 8.507059e+37 }
 0x5ed   : > { %v2314_v58 = vpop.eup %2313 }
 0x5ee   : > { %v2316_v59 = vpop.eup %2315  ;;  %v2017_v60 = vmul.f32 %v2314_v58, %v2014_v49  ;;  %vm2022_vm14 = vweird.f32 %v2314_v58 }
 0x5ef   : > { %v2032_v51 = vmul.f32 %v2316_v59, %v2015_v57  ;;  %vm2037_vm2 = vweird.f32 %v2316_v59  ;;  %vm2023_vm1 = vmor %vm2021_vm15, %vm2022_vm14 }
 0x5f0   : > { %v2018_v54 = vsub.f32 1.0, %v2017_v60  ;;  %vm2038_vm7 = vmor %vm2036_vm4, %vm2037_vm2 }
 0x5f1   : > { %v2033_v5 = vsub.f32 1.0, %v2032_v51 }
 0x5f2   : > { %v2019_v2 = vmul.f32 %v2314_v58, %v2018_v54 }
 0x5f3   : > { %v2034_v62 = vmul.f32 %v2316_v59, %v2033_v5 }
 0x5f4   : > { %v2020_v3 = vadd.f32 %v2314_v58, %v2019_v2 }
 0x5f5   : > { %v2035_v7 = vadd.f32 %v2316_v59, %v2034_v62 }
 0x5f6   : > { %v2024_v42 = vsel %vm2023_vm1, %v2314_v58, %v2020_v3 }
 0x5f7   : > { %v2029_v10 = vsel %vm2026_vm5, %v2028_v6, %v2024_v42  ;;  %v2039_v11 = vsel %vm2038_vm7, %v2316_v59, %v2035_v7 }
 0x5f8   : > { %v2044_v12 = vsel %vm2041_vm0, %v2043_v55, %v2039_v11  ;;  %v2046_v13 = vmul.f32 %v2029_v10, %v2006_v48 }
 0x5f9   : > { %v2047_v20 = vmul.f32 %v2044_v12, %v2007_v25 }
 0x5fa   : > { %v2105_v14 = vadd.f32 %v2083_v19, %v2046_v13 }
 0x5fb   : > { %v2106_v17 = vadd.f32 %v2103_v21, %v2047_v20 }
 0x5fc   : > { %2107 = vst [vmem:[%s535_s19] sm:$0xff] %v2105_v14 }
 0x5fd   : > { %2108 = vst [vmem:[%s535_s19 + $0x8] sm:$0xff] %v2106_v17 }
 0x5fe PF: > { %s26_s21 = sadd.s32 1, %s2323_s21  }
 0x5ff   : > { %p23_p4 = scmp.ge.s32.totalorder %s26_s21, 4  }
 0x601   :  { %25 = sbr.rel (!%p23_p4) target bundleno = 2 (0x2), region = 141 }

</bundles_post_ra>
